<compile_context>
chip_gen: v6e
topology: v6e:2x2x1
jax: 0.10.0
libtpu: 0.0.40
codegen_flags: <defaults>
</compile_context>

<pallas_src>
import math

import jax
import jax.numpy as jnp
import numpy as np
from jax.experimental import pallas as pl
from jax.experimental.pallas import tpu as pltpu

# ----------------------------- configuration -----------------------------
B = 2
C = 32                  # inp == oup (required for the residual when downsample=False)
IH = IW = 8
N = IH * IW             # tokens per image = 64
BN = B * N              # fused token axis = 128
HEADS = 2
DIM_HEAD = 8
INNER = HEADS * DIM_HEAD          # 16
HID = C * 4                       # ff hidden dim = 128
SCALE = DIM_HEAD ** (-0.5)
EPS = 1e-6                        # the module's custom LayerNorm uses eps=1e-06


def _gelu_erf(x):
    # torch nn.GELU() default = exact erf GELU.  erf evaluated with the
    # Abramowitz-Stegun 7.1.26 polynomial (|err| < 1.5e-7) so the kernel only
    # needs exp/div/mul (all VPU/EUP-native, no dependence on an erf lowering).
    z = x * (1.0 / math.sqrt(2.0))
    az = jnp.abs(z)
    t = 1.0 / (1.0 + 0.3275911 * az)
    poly = ((((1.061405429 * t - 1.453152027) * t + 1.421413741) * t
             - 0.284496736) * t + 0.254829592) * t
    erf_abs = 1.0 - poly * jnp.exp(-az * az)
    erf_z = jnp.where(z >= 0.0, erf_abs, -erf_abs)
    return 0.5 * x * (1.0 + erf_z)


# ----------------------------- pallas kernel -----------------------------
def transformer_block_kernel(
    x_ref,        # (C, B*N)          channel-major input slab
    wqkv_ref,     # (3*INNER, C)      fused QKV weight, transposed
    wout_ref,     # (C, INNER)        to_out weight, transposed
    w1_ref,       # (HID, C)          ff first weight, transposed
    w2_ref,       # (C, HID)          ff second weight, transposed
    vecs_ref,     # (C, 8)            [ln1w ln1b ln2w ln2b bout b2 0 0] as columns
    b1_ref,       # (HID, 1)          ff first bias as a column
    consts_ref,   # (192, 128)        rows 0:128 bias_all, 128:160 kv_mask, 160:192 q_mask
    o_ref,        # (C, B*N)          channel-major output slab
):
    x = x_ref[...]                                          # (32, 128)

    vecs = vecs_ref[...]
    ln1w = vecs[:, 0:1]
    ln1b = vecs[:, 1:2]
    ln2w = vecs[:, 2:3]
    ln2b = vecs[:, 3:4]
    bout = vecs[:, 4:5]
    b2 = vecs[:, 5:6]

    consts = consts_ref[...]
    bias_all = consts[0:HEADS * N]                          # (128, 128) rel-pos bias
    kv_mask = consts[HEADS * N:HEADS * N + B * INNER]       # (32, 128)  head block-diag
    q_mask = consts[HEADS * N + B * INNER:]                 # (32, 128)  batch block-diag
    den_mask = kv_mask[0:INNER]                             # (16, 128)
    left = q_mask[0:INNER]                                  # (16, 128)  lanes < N

    # ---- LayerNorm(inp) over channels (axis 0), channel-major ----
    mu = jnp.mean(x, axis=0, keepdims=True)                 # (1, 128)
    xc = x - mu
    var = jnp.mean(xc * xc, axis=0, keepdims=True)
    xn = xc * jax.lax.rsqrt(var + EPS) * ln1w + ln1b        # (32, 128)

    # ---- fused QKV: one (48,32) @ (32,128) matmul ----
    qkv = jnp.dot(wqkv_ref[...], xn, preferred_element_type=jnp.float32)   # (48, 128)
    q = qkv[0:INNER]                                        # (16, 128)
    k = qkv[INNER:2 * INNER]
    v = qkv[2 * INNER:]

    # ---- batch+head block-diagonal operands (all built with roll+select, no
    #      transposes, masks precomputed host-side) ----
    right = 1.0 - left

    def dup_batch(t):
        # (INNER, B*N) -> (B*INNER, HEADS*N): row block b holds batch b's features
        # duplicated across both head column blocks.
        tr = pltpu.roll(t, shift=N, axis=1)                 # lane halves swapped
        return jnp.concatenate([t * left + tr * right,
                                tr * left + t * right], axis=0)

    k_big = dup_batch(k) * kv_mask                          # (32, 128)
    v_big = dup_batch(v) * kv_mask                          # (32, 128)
    q_big = jnp.concatenate([q, q], axis=0) * q_mask        # (32, 128)

    # ---- logits for all (head,key) x (batch,query) in ONE matmul ----
    # dots[(h,m),(b,n)] = sum_d k_b[d,m] * q_b[d,n]  (d restricted to head h)
    dots = jax.lax.dot_general(
        k_big, q_big, (((0,), (0,)), ((), ())),
        preferred_element_type=jnp.float32) * SCALE + bias_all          # (128, 128)

    # per-(query, head) max over the key axis (sublane halves), then exp
    d0 = dots[0:N]
    d1 = dots[N:]
    m0 = jnp.max(d0, axis=0, keepdims=True)                 # (1, 128)
    m1 = jnp.max(d1, axis=0, keepdims=True)
    p = jnp.concatenate([jnp.exp(d0 - m0), jnp.exp(d1 - m1)], axis=0)   # (128, 128)

    # ---- fused numerator | denominator epilogue: ONE matmul ----
    lhs_epi = jnp.concatenate([v_big, den_mask], axis=0)                # (48, 128)
    nd = jnp.dot(lhs_epi, p, preferred_element_type=jnp.float32)        # (48, 128)
    num = nd[0:INNER] * q_mask[0:INNER] + nd[INNER:2 * INNER] * q_mask[INNER:2 * INNER]
    den = nd[2 * INNER:]                                    # (16, 128), >= 1 by construction
    attn = num / den                                        # (16, 128) exact normalisation

    # ---- output projection + residual #1 ----
    x1 = x + jnp.dot(wout_ref[...], attn, preferred_element_type=jnp.float32) + bout

    # ---- LayerNorm(oup) + FeedForward (exact-erf GELU) + residual #2 ----
    mu2 = jnp.mean(x1, axis=0, keepdims=True)
    xc2 = x1 - mu2
    var2 = jnp.mean(xc2 * xc2, axis=0, keepdims=True)
    x2 = xc2 * jax.lax.rsqrt(var2 + EPS) * ln2w + ln2b      # (32, 128)

    h = jnp.dot(w1_ref[...], x2, preferred_element_type=jnp.float32) + b1_ref[...]
    h = _gelu_erf(h)                                        # (128, 128) full-lane tile
    y = x1 + jnp.dot(w2_ref[...], h, preferred_element_type=jnp.float32) + b2

    o_ref[...] = y                                          # (32, 128) unmasked stores


# ----------------------------- wrapper -----------------------------------
@jax.jit
def transformer_block(x_nchw, kparams):
    """x_nchw: (B, C, IH, IW) float32 -> (B, C, IH, IW) float32."""
    # tiny wrapper-side permute to the lane-dense channel-major slab
    x_cm = jnp.transpose(x_nchw.reshape(B, C, N), (1, 0, 2)).reshape(C, BN)
    vmem = pl.BlockSpec(memory_space=pltpu.MemorySpace.VMEM)
    y_cm = pl.pallas_call(
        transformer_block_kernel,
        out_shape=jax.ShapeDtypeStruct((C, BN), jnp.float32),
        in_specs=[vmem] * (1 + len(kparams)),
        out_specs=vmem,
    )(x_cm, *kparams)
    return jnp.transpose(y_cm.reshape(C, B, N), (1, 0, 2)).reshape(B, C, IH, IW)


# ------------------------ parameter construction -------------------------
def make_relative_index():
    """Exactly mirrors the PyTorch buffer computation."""
    ci, cj = np.meshgrid(np.arange(IH), np.arange(IW), indexing="ij")
    coords = np.stack([ci, cj]).reshape(2, -1)                      # (2, N)
    rel = coords[:, :, None] - coords[:, None, :]                   # (2, N, N)
    rel[0] += IH - 1
    rel[1] += IW - 1
    rel[0] *= 2 * IW - 1
    rel = np.transpose(rel, (1, 2, 0))                              # h w c
    return rel.sum(-1).reshape(-1).astype(np.int32)                 # (N*N,)


def make_params(key):
    """Torch-like parameter set for the module (LN params perturbed to exercise them)."""
    ks = jax.random.split(key, 12)
    ln1w = 1.0 + 0.1 * jax.random.normal(ks[0], (C,), jnp.float32)
    ln1b = 0.05 * jax.random.normal(ks[1], (C,), jnp.float32)
    ln2w = 1.0 + 0.1 * jax.random.normal(ks[2], (C,), jnp.float32)
    ln2b = 0.05 * jax.random.normal(ks[3], (C,), jnp.float32)
    wqkv = jax.random.normal(ks[4], (C, 3 * INNER), jnp.float32) * 0.05
    wout = jax.random.normal(ks[5], (INNER, C), jnp.float32) * 0.05
    bout = jax.random.normal(ks[6], (C,), jnp.float32) * 0.01
    w1 = jax.random.normal(ks[7], (C, HID), jnp.float32) * 0.05
    b1 = jax.random.normal(ks[8], (HID,), jnp.float32) * 0.01
    w2 = jax.random.normal(ks[9], (HID, C), jnp.float32) * 0.05
    b2 = jax.random.normal(ks[10], (C,), jnp.float32) * 0.01
    # relative_bias_table is zero-initialised in torch; use a small deterministic
    # random table so the bias path is actually exercised.
    table = jax.random.normal(ks[11], ((2 * IH - 1) * (2 * IW - 1), HEADS),
                              jnp.float32) * 0.02
    return (ln1w, ln1b, wqkv, wout, bout, table, ln2w, ln2b, w1, b1, w2, b2)


def pack_params(p):
    """Torch-like params -> kernel-friendly channel-major layout (done once, host-side)."""
    (ln1w, ln1b, wqkv, wout, bout, table, ln2w, ln2b, w1, b1, w2, b2) = p
    wqkv_t = wqkv.T                                   # (48, 32)
    wout_t = wout.T                                   # (32, 16)
    w1_t = w1.T                                       # (128, 32)
    w2_t = w2.T                                       # (32, 128)

    col = lambda a: a.reshape(-1, 1)
    vecs = jnp.concatenate(
        [col(ln1w), col(ln1b), col(ln2w), col(ln2b), col(bout), col(b2),
         jnp.zeros((C, 2), jnp.float32)], axis=1)     # (32, 8)
    b1_col = col(b1)                                  # (128, 1)

    # relative-position bias in (head,key) x (batch,query) orientation
    rel_idx = jnp.asarray(make_relative_index())                    # (N*N,)
    rel = table[rel_idx].reshape(N, N, HEADS)                       # [n, m, h]
    bias_t = jnp.transpose(rel, (2, 1, 0)).reshape(HEADS * N, N)    # [(h,m), n]
    bias_all = jnp.concatenate([bias_t, bias_t], axis=1)            # [(h,m), (b,n)]

    # block-diagonal selector masks (compile-time constants, built host-side)
    d = np.arange(INNER)
    head_of_col = np.arange(HEADS * N) // N
    bd = (d[:, None] // DIM_HEAD == head_of_col[None, :]).astype(np.float32)   # (16,128)
    kv_mask = np.concatenate([bd, bd], axis=0)                                  # (32,128)
    batch_of_row = np.repeat(np.arange(B), INNER)
    batch_of_col = np.arange(BN) // N
    q_mask = (batch_of_row[:, None] == batch_of_col[None, :]).astype(np.float32)  # (32,128)

    consts = jnp.concatenate(
        [bias_all, jnp.asarray(kv_mask), jnp.asarray(q_mask)], axis=0)          # (192,128)

    return (wqkv_t, wout_t, w1_t, w2_t, vecs, b1_col, consts)


# ---------------------------- pure-JAX reference --------------------------
def reference(x_nchw, torch_params):
    (ln1w, ln1b, wqkv, wout, bout, table, ln2w, ln2b, w1, b1, w2, b2) = torch_params
    rel_idx = jnp.asarray(make_relative_index())
    rel_bias = table[rel_idx].reshape(N, N, HEADS).transpose(2, 0, 1)   # (H, N, N)

    x = jnp.transpose(x_nchw, (0, 2, 3, 1)).reshape(B, N, C)

    def ln(t, w, b_):
        mu = t.mean(-1, keepdims=True)
        var = ((t - mu) ** 2).mean(-1, keepdims=True)
        return (t - mu) / jnp.sqrt(var + EPS) * w + b_

    xn = ln(x, ln1w, ln1b)
    qkv = xn @ wqkv                                      # (B, N, 3*INNER)
    q, k, v = jnp.split(qkv, 3, axis=-1)

    def heads(t):
        return t.reshape(B, N, HEADS, DIM_HEAD).transpose(0, 2, 1, 3)

    q, k, v = heads(q), heads(k), heads(v)
    dots = jnp.einsum("bhnd,bhmd->bhnm", q, k) * SCALE + rel_bias[None]
    attn = jax.nn.softmax(dots, axis=-1)
    out = jnp.einsum("bhnm,bhmd->bhnd", attn, v)
    out = out.transpose(0, 2, 1, 3).reshape(B, N, INNER)
    out = out @ wout + bout
    x1 = x + out

    x2 = ln(x1, ln2w, ln2b)
    h = x2 @ w1 + b1
    h = 0.5 * h * (1.0 + jax.lax.erf(h / math.sqrt(2.0)))    # exact erf GELU
    y = x1 + h @ w2 + b2
    return jnp.transpose(y.reshape(B, IH, IW, C), (0, 3, 1, 2))


# --------------------------------- main -----------------------------------
if __name__ == "__main__":
    key = jax.random.PRNGKey(0)
    kx, kp = jax.random.split(key)
    x = jax.random.normal(kx, (B, C, IH, IW), jnp.float32)

    torch_params = make_params(kp)
    kparams = pack_params(torch_params)

    out = transformer_block(x, kparams)
    out = jax.block_until_ready(out)

    ref = reference(x, torch_params)
    # All math is f32 with exact softmax normalisation; observed agreement is far
    # tighter, tolerance kept loose only for MXU f32 accumulation-order differences
    # and the 1.5e-7-accurate polynomial erf used inside the kernel.
    np.testing.assert_allclose(np.asarray(out), np.asarray(ref),
                               rtol=1e-3, atol=1e-3)
    print("KERNEL_OK")
</pallas_src>

<mosaic_0001>
module attributes {stable_mosaic.version = 11 : i64} {
  func.func @transformer_block_kernel(%arg0: memref<32x128xf32, #tpu.memory_space<vmem>>, %arg1: memref<48x32xf32, #tpu.memory_space<vmem>>, %arg2: memref<32x16xf32, #tpu.memory_space<vmem>>, %arg3: memref<128x32xf32, #tpu.memory_space<vmem>>, %arg4: memref<32x128xf32, #tpu.memory_space<vmem>>, %arg5: memref<32x8xf32, #tpu.memory_space<vmem>>, %arg6: memref<128x1xf32, #tpu.memory_space<vmem>>, %arg7: memref<192x128xf32, #tpu.memory_space<vmem>>, %arg8: memref<32x128xf32, #tpu.memory_space<vmem>>) attributes {dimension_semantics = [], scalar_prefetch = 0 : i64, scratch_operands = 0 : i64, tpu.core_type = #tpu.core_type<tc>} {
    %c0 = arith.constant 0 : index
    %c0_0 = arith.constant 0 : index
    %0 = vector.load %arg0[%c0, %c0_0] : memref<32x128xf32, #tpu.memory_space<vmem>>, vector<32x128xf32>
    %c0_1 = arith.constant 0 : index
    %c0_2 = arith.constant 0 : index
    %1 = vector.load %arg5[%c0_1, %c0_2] : memref<32x8xf32, #tpu.memory_space<vmem>>, vector<32x8xf32>
    %2 = vector.extract_strided_slice %1 {offsets = [0, 0], sizes = [32, 1], strides = [1, 1]} : vector<32x8xf32> to vector<32x1xf32>
    %3 = vector.extract_strided_slice %1 {offsets = [0, 1], sizes = [32, 1], strides = [1, 1]} : vector<32x8xf32> to vector<32x1xf32>
    %4 = vector.extract_strided_slice %1 {offsets = [0, 2], sizes = [32, 1], strides = [1, 1]} : vector<32x8xf32> to vector<32x1xf32>
    %5 = vector.extract_strided_slice %1 {offsets = [0, 3], sizes = [32, 1], strides = [1, 1]} : vector<32x8xf32> to vector<32x1xf32>
    %6 = vector.extract_strided_slice %1 {offsets = [0, 4], sizes = [32, 1], strides = [1, 1]} : vector<32x8xf32> to vector<32x1xf32>
    %7 = vector.extract_strided_slice %1 {offsets = [0, 5], sizes = [32, 1], strides = [1, 1]} : vector<32x8xf32> to vector<32x1xf32>
    %c0_3 = arith.constant 0 : index
    %c0_4 = arith.constant 0 : index
    %8 = vector.load %arg7[%c0_3, %c0_4] : memref<192x128xf32, #tpu.memory_space<vmem>>, vector<192x128xf32>
    %9 = vector.extract_strided_slice %8 {offsets = [0, 0], sizes = [128, 128], strides = [1, 1]} : vector<192x128xf32> to vector<128x128xf32>
    %10 = vector.extract_strided_slice %8 {offsets = [128, 0], sizes = [32, 128], strides = [1, 1]} : vector<192x128xf32> to vector<32x128xf32>
    %11 = vector.extract_strided_slice %8 {offsets = [160, 0], sizes = [32, 128], strides = [1, 1]} : vector<192x128xf32> to vector<32x128xf32>
    %12 = vector.extract_strided_slice %10 {offsets = [0, 0], sizes = [16, 128], strides = [1, 1]} : vector<32x128xf32> to vector<16x128xf32>
    %13 = vector.extract_strided_slice %11 {offsets = [0, 0], sizes = [16, 128], strides = [1, 1]} : vector<32x128xf32> to vector<16x128xf32>
    %cst = arith.constant dense<0.000000e+00> : vector<128xf32>
    %14 = vector.multi_reduction <add>, %0, %cst [0] : vector<32x128xf32> to vector<128xf32>
    %15 = vector.shape_cast %14 : vector<128xf32> to vector<1x128xf32>
    %cst_5 = arith.constant 3.200000e+01 : f32
    %16 = vector.broadcast %cst_5 : f32 to vector<1x128xf32>
    %17 = arith.divf %15, %16 : vector<1x128xf32>
    %18 = vector.broadcast %17 : vector<1x128xf32> to vector<32x128xf32>
    %19 = arith.subf %0, %18 : vector<32x128xf32>
    %20 = arith.mulf %19, %19 : vector<32x128xf32>
    %cst_6 = arith.constant dense<0.000000e+00> : vector<128xf32>
    %21 = vector.multi_reduction <add>, %20, %cst_6 [0] : vector<32x128xf32> to vector<128xf32>
    %22 = vector.shape_cast %21 : vector<128xf32> to vector<1x128xf32>
    %cst_7 = arith.constant 3.200000e+01 : f32
    %23 = vector.broadcast %cst_7 : f32 to vector<1x128xf32>
    %24 = arith.divf %22, %23 : vector<1x128xf32>
    %cst_8 = arith.constant 9.99999997E-7 : f32
    %25 = vector.broadcast %cst_8 : f32 to vector<1x128xf32>
    %26 = arith.addf %24, %25 : vector<1x128xf32>
    %27 = math.rsqrt %26 : vector<1x128xf32>
    %28 = vector.broadcast %27 : vector<1x128xf32> to vector<32x128xf32>
    %29 = arith.mulf %19, %28 : vector<32x128xf32>
    %30 = vector.broadcast %2 : vector<32x1xf32> to vector<32x128xf32>
    %31 = arith.mulf %29, %30 : vector<32x128xf32>
    %32 = vector.broadcast %3 : vector<32x1xf32> to vector<32x128xf32>
    %33 = arith.addf %31, %32 : vector<32x128xf32>
    %c0_9 = arith.constant 0 : index
    %c0_10 = arith.constant 0 : index
    %34 = vector.load %arg1[%c0_9, %c0_10] : memref<48x32xf32, #tpu.memory_space<vmem>>, vector<48x32xf32>
    %cst_11 = arith.constant dense<0.000000e+00> : vector<48x128xf32>
    %35 = tpu.matmul %34, %33, %cst_11 {dimension_numbers = #tpu.dot_dimension_numbers<[1], [0], [0], [1], [0, 0, 1, 1], [], []>} : vector<48x32xf32>, vector<32x128xf32>, vector<48x128xf32> -> vector<48x128xf32>
    %36 = vector.extract_strided_slice %35 {offsets = [0, 0], sizes = [16, 128], strides = [1, 1]} : vector<48x128xf32> to vector<16x128xf32>
    %37 = vector.extract_strided_slice %35 {offsets = [16, 0], sizes = [16, 128], strides = [1, 1]} : vector<48x128xf32> to vector<16x128xf32>
    %38 = vector.extract_strided_slice %35 {offsets = [32, 0], sizes = [16, 128], strides = [1, 1]} : vector<48x128xf32> to vector<16x128xf32>
    %cst_12 = arith.constant 1.000000e+00 : f32
    %39 = vector.broadcast %cst_12 : f32 to vector<16x128xf32>
    %40 = arith.subf %39, %13 : vector<16x128xf32>
    %c64_i32 = arith.constant 64 : i32
    %41 = tpu.dynamic_rotate %37 by %c64_i32 dim 1 : vector<16x128xf32>, i32 -> vector<16x128xf32>
    %42 = arith.mulf %37, %13 : vector<16x128xf32>
    %43 = arith.mulf %41, %40 : vector<16x128xf32>
    %44 = arith.addf %42, %43 : vector<16x128xf32>
    %45 = arith.mulf %41, %13 : vector<16x128xf32>
    %46 = arith.mulf %37, %40 : vector<16x128xf32>
    %47 = arith.addf %45, %46 : vector<16x128xf32>
    %48 = tpu.concatenate %44, %47 in 0 : vector<16x128xf32>, vector<16x128xf32> -> vector<32x128xf32>
    %49 = arith.mulf %48, %10 : vector<32x128xf32>
    %c64_i32_13 = arith.constant 64 : i32
    %50 = tpu.dynamic_rotate %38 by %c64_i32_13 dim 1 : vector<16x128xf32>, i32 -> vector<16x128xf32>
    %51 = arith.mulf %38, %13 : vector<16x128xf32>
    %52 = arith.mulf %50, %40 : vector<16x128xf32>
    %53 = arith.addf %51, %52 : vector<16x128xf32>
    %54 = arith.mulf %50, %13 : vector<16x128xf32>
    %55 = arith.mulf %38, %40 : vector<16x128xf32>
    %56 = arith.addf %54, %55 : vector<16x128xf32>
    %57 = tpu.concatenate %53, %56 in 0 : vector<16x128xf32>, vector<16x128xf32> -> vector<32x128xf32>
    %58 = arith.mulf %57, %10 : vector<32x128xf32>
    %59 = tpu.concatenate %36, %36 in 0 : vector<16x128xf32>, vector<16x128xf32> -> vector<32x128xf32>
    %60 = arith.mulf %59, %11 : vector<32x128xf32>
    %cst_14 = arith.constant dense<0.000000e+00> : vector<128x128xf32>
    %61 = tpu.matmul %49, %60, %cst_14 {dimension_numbers = #tpu.dot_dimension_numbers<[0], [0], [1], [1], [0, 1, 1, 1], [], []>} : vector<32x128xf32>, vector<32x128xf32>, vector<128x128xf32> -> vector<128x128xf32>
    %cst_15 = arith.constant 0.353553385 : f32
    %62 = vector.broadcast %cst_15 : f32 to vector<128x128xf32>
    %63 = arith.mulf %61, %62 : vector<128x128xf32>
    %64 = arith.addf %63, %9 : vector<128x128xf32>
    %65 = vector.extract_strided_slice %64 {offsets = [0, 0], sizes = [64, 128], strides = [1, 1]} : vector<128x128xf32> to vector<64x128xf32>
    %66 = vector.extract_strided_slice %64 {offsets = [64, 0], sizes = [64, 128], strides = [1, 1]} : vector<128x128xf32> to vector<64x128xf32>
    %cst_16 = arith.constant dense<0xFF800000> : vector<128xf32>
    %67 = vector.multi_reduction <maximumf>, %65, %cst_16 [0] : vector<64x128xf32> to vector<128xf32>
    %68 = vector.shape_cast %67 : vector<128xf32> to vector<1x128xf32>
    %cst_17 = arith.constant dense<0xFF800000> : vector<128xf32>
    %69 = vector.multi_reduction <maximumf>, %66, %cst_17 [0] : vector<64x128xf32> to vector<128xf32>
    %70 = vector.shape_cast %69 : vector<128xf32> to vector<1x128xf32>
    %71 = vector.broadcast %68 : vector<1x128xf32> to vector<64x128xf32>
    %72 = arith.subf %65, %71 : vector<64x128xf32>
    %73 = math.exp %72 : vector<64x128xf32>
    %74 = vector.broadcast %70 : vector<1x128xf32> to vector<64x128xf32>
    %75 = arith.subf %66, %74 : vector<64x128xf32>
    %76 = math.exp %75 : vector<64x128xf32>
    %77 = tpu.concatenate %73, %76 in 0 : vector<64x128xf32>, vector<64x128xf32> -> vector<128x128xf32>
    %78 = tpu.concatenate %58, %12 in 0 : vector<32x128xf32>, vector<16x128xf32> -> vector<48x128xf32>
    %cst_18 = arith.constant dense<0.000000e+00> : vector<48x128xf32>
    %79 = tpu.matmul %78, %77, %cst_18 {dimension_numbers = #tpu.dot_dimension_numbers<[1], [0], [0], [1], [0, 0, 1, 1], [], []>} : vector<48x128xf32>, vector<128x128xf32>, vector<48x128xf32> -> vector<48x128xf32>
    %80 = vector.extract_strided_slice %79 {offsets = [0, 0], sizes = [16, 128], strides = [1, 1]} : vector<48x128xf32> to vector<16x128xf32>
    %81 = vector.extract_strided_slice %11 {offsets = [0, 0], sizes = [16, 128], strides = [1, 1]} : vector<32x128xf32> to vector<16x128xf32>
    %82 = arith.mulf %80, %81 : vector<16x128xf32>
    %83 = vector.extract_strided_slice %79 {offsets = [16, 0], sizes = [16, 128], strides = [1, 1]} : vector<48x128xf32> to vector<16x128xf32>
    %84 = vector.extract_strided_slice %11 {offsets = [16, 0], sizes = [16, 128], strides = [1, 1]} : vector<32x128xf32> to vector<16x128xf32>
    %85 = arith.mulf %83, %84 : vector<16x128xf32>
    %86 = arith.addf %82, %85 : vector<16x128xf32>
    %87 = vector.extract_strided_slice %79 {offsets = [32, 0], sizes = [16, 128], strides = [1, 1]} : vector<48x128xf32> to vector<16x128xf32>
    %88 = arith.divf %86, %87 : vector<16x128xf32>
    %c0_19 = arith.constant 0 : index
    %c0_20 = arith.constant 0 : index
    %89 = vector.load %arg2[%c0_19, %c0_20] : memref<32x16xf32, #tpu.memory_space<vmem>>, vector<32x16xf32>
    %cst_21 = arith.constant dense<0.000000e+00> : vector<32x128xf32>
    %90 = tpu.matmul %89, %88, %cst_21 {dimension_numbers = #tpu.dot_dimension_numbers<[1], [0], [0], [1], [0, 0, 1, 1], [], []>} : vector<32x16xf32>, vector<16x128xf32>, vector<32x128xf32> -> vector<32x128xf32>
    %91 = arith.addf %0, %90 : vector<32x128xf32>
    %92 = vector.broadcast %6 : vector<32x1xf32> to vector<32x128xf32>
    %93 = arith.addf %91, %92 : vector<32x128xf32>
    %cst_22 = arith.constant dense<0.000000e+00> : vector<128xf32>
    %94 = vector.multi_reduction <add>, %93, %cst_22 [0] : vector<32x128xf32> to vector<128xf32>
    %95 = vector.shape_cast %94 : vector<128xf32> to vector<1x128xf32>
    %cst_23 = arith.constant 3.200000e+01 : f32
    %96 = vector.broadcast %cst_23 : f32 to vector<1x128xf32>
    %97 = arith.divf %95, %96 : vector<1x128xf32>
    %98 = vector.broadcast %97 : vector<1x128xf32> to vector<32x128xf32>
    %99 = arith.subf %93, %98 : vector<32x128xf32>
    %100 = arith.mulf %99, %99 : vector<32x128xf32>
    %cst_24 = arith.constant dense<0.000000e+00> : vector<128xf32>
    %101 = vector.multi_reduction <add>, %100, %cst_24 [0] : vector<32x128xf32> to vector<128xf32>
    %102 = vector.shape_cast %101 : vector<128xf32> to vector<1x128xf32>
    %cst_25 = arith.constant 3.200000e+01 : f32
    %103 = vector.broadcast %cst_25 : f32 to vector<1x128xf32>
    %104 = arith.divf %102, %103 : vector<1x128xf32>
    %cst_26 = arith.constant 9.99999997E-7 : f32
    %105 = vector.broadcast %cst_26 : f32 to vector<1x128xf32>
    %106 = arith.addf %104, %105 : vector<1x128xf32>
    %107 = math.rsqrt %106 : vector<1x128xf32>
    %108 = vector.broadcast %107 : vector<1x128xf32> to vector<32x128xf32>
    %109 = arith.mulf %99, %108 : vector<32x128xf32>
    %110 = vector.broadcast %4 : vector<32x1xf32> to vector<32x128xf32>
    %111 = arith.mulf %109, %110 : vector<32x128xf32>
    %112 = vector.broadcast %5 : vector<32x1xf32> to vector<32x128xf32>
    %113 = arith.addf %111, %112 : vector<32x128xf32>
    %c0_27 = arith.constant 0 : index
    %c0_28 = arith.constant 0 : index
    %114 = vector.load %arg3[%c0_27, %c0_28] : memref<128x32xf32, #tpu.memory_space<vmem>>, vector<128x32xf32>
    %cst_29 = arith.constant dense<0.000000e+00> : vector<128x128xf32>
    %115 = tpu.matmul %114, %113, %cst_29 {dimension_numbers = #tpu.dot_dimension_numbers<[1], [0], [0], [1], [0, 0, 1, 1], [], []>} : vector<128x32xf32>, vector<32x128xf32>, vector<128x128xf32> -> vector<128x128xf32>
    %c0_30 = arith.constant 0 : index
    %c0_31 = arith.constant 0 : index
    %116 = vector.load %arg6[%c0_30, %c0_31] : memref<128x1xf32, #tpu.memory_space<vmem>>, vector<128x1xf32>
    %117 = vector.broadcast %116 : vector<128x1xf32> to vector<128x128xf32>
    %118 = arith.addf %115, %117 : vector<128x128xf32>
    %cst_32 = arith.constant 0.707106769 : f32
    %119 = vector.broadcast %cst_32 : f32 to vector<128x128xf32>
    %120 = arith.mulf %118, %119 : vector<128x128xf32>
    %121 = math.absf %120 : vector<128x128xf32>
    %cst_33 = arith.constant 0.327591091 : f32
    %122 = vector.broadcast %cst_33 : f32 to vector<128x128xf32>
    %123 = arith.mulf %122, %121 : vector<128x128xf32>
    %cst_34 = arith.constant 1.000000e+00 : f32
    %124 = vector.broadcast %cst_34 : f32 to vector<128x128xf32>
    %125 = arith.addf %124, %123 : vector<128x128xf32>
    %cst_35 = arith.constant 1.000000e+00 : f32
    %126 = vector.broadcast %cst_35 : f32 to vector<128x128xf32>
    %127 = arith.divf %126, %125 : vector<128x128xf32>
    %cst_36 = arith.constant 1.06140542 : f32
    %128 = vector.broadcast %cst_36 : f32 to vector<128x128xf32>
    %129 = arith.mulf %128, %127 : vector<128x128xf32>
    %cst_37 = arith.constant 1.45315206 : f32
    %130 = vector.broadcast %cst_37 : f32 to vector<128x128xf32>
    %131 = arith.subf %129, %130 : vector<128x128xf32>
    %132 = arith.mulf %131, %127 : vector<128x128xf32>
    %cst_38 = arith.constant 1.42141378 : f32
    %133 = vector.broadcast %cst_38 : f32 to vector<128x128xf32>
    %134 = arith.addf %132, %133 : vector<128x128xf32>
    %135 = arith.mulf %134, %127 : vector<128x128xf32>
    %cst_39 = arith.constant 0.284496725 : f32
    %136 = vector.broadcast %cst_39 : f32 to vector<128x128xf32>
    %137 = arith.subf %135, %136 : vector<128x128xf32>
    %138 = arith.mulf %137, %127 : vector<128x128xf32>
    %cst_40 = arith.constant 0.254829586 : f32
    %139 = vector.broadcast %cst_40 : f32 to vector<128x128xf32>
    %140 = arith.addf %138, %139 : vector<128x128xf32>
    %141 = arith.mulf %140, %127 : vector<128x128xf32>
    %cst_41 = arith.constant 0.000000e+00 : f32
    %142 = vector.broadcast %cst_41 : f32 to vector<128x128xf32>
    %143 = arith.subf %142, %121 : vector<128x128xf32>
    %144 = arith.mulf %143, %121 : vector<128x128xf32>
    %145 = math.exp %144 : vector<128x128xf32>
    %146 = arith.mulf %141, %145 : vector<128x128xf32>
    %cst_42 = arith.constant 1.000000e+00 : f32
    %147 = vector.broadcast %cst_42 : f32 to vector<128x128xf32>
    %148 = arith.subf %147, %146 : vector<128x128xf32>
    %cst_43 = arith.constant 0.000000e+00 : f32
    %149 = vector.broadcast %cst_43 : f32 to vector<128x128xf32>
    %150 = arith.cmpf oge, %120, %149 : vector<128x128xf32>
    %cst_44 = arith.constant 0.000000e+00 : f32
    %151 = vector.broadcast %cst_44 : f32 to vector<128x128xf32>
    %152 = arith.subf %151, %148 : vector<128x128xf32>
    %153 = arith.select %150, %148, %152 : vector<128x128xi1>, vector<128x128xf32>
    %cst_45 = arith.constant 5.000000e-01 : f32
    %154 = vector.broadcast %cst_45 : f32 to vector<128x128xf32>
    %155 = arith.mulf %154, %118 : vector<128x128xf32>
    %cst_46 = arith.constant 1.000000e+00 : f32
    %156 = vector.broadcast %cst_46 : f32 to vector<128x128xf32>
    %157 = arith.addf %156, %153 : vector<128x128xf32>
    %158 = arith.mulf %155, %157 : vector<128x128xf32>
    %c0_47 = arith.constant 0 : index
    %c0_48 = arith.constant 0 : index
    %159 = vector.load %arg4[%c0_47, %c0_48] : memref<32x128xf32, #tpu.memory_space<vmem>>, vector<32x128xf32>
    %cst_49 = arith.constant dense<0.000000e+00> : vector<32x128xf32>
    %160 = tpu.matmul %159, %158, %cst_49 {dimension_numbers = #tpu.dot_dimension_numbers<[1], [0], [0], [1], [0, 0, 1, 1], [], []>} : vector<32x128xf32>, vector<128x128xf32>, vector<32x128xf32> -> vector<32x128xf32>
    %161 = arith.addf %93, %160 : vector<32x128xf32>
    %162 = vector.broadcast %7 : vector<32x1xf32> to vector<32x128xf32>
    %163 = arith.addf %161, %162 : vector<32x128xf32>
    %c0_50 = arith.constant 0 : index
    %c0_51 = arith.constant 0 : index
    %164 = vector.load %arg8[%c0_50, %c0_51] : memref<32x128xf32, #tpu.memory_space<vmem>>, vector<32x128xf32>
    tpu.vector_store %arg8[%c0_50, %c0_51], %163 {strides = array<i32>} : memref<32x128xf32, #tpu.memory_space<vmem>>, vector<32x128xf32>,
    return
  }
}

</mosaic_0001>

<bundles_post_ra>
// kernel: transformer_block.1
= control target key start
LH: loop header
LB: loop body
LE: loop exit
PB: predicated region body
PF: predicated region fallthrough
CT: control target
= control target key end

     0   :  { %v2271_v0 = vmov 1   ;;  %v3168_v1 = vmov 0   ;;  %vm146_vm0 = vcmask 261120   ;;  %s2273_s14 = smov 64   ;;  %vm746_vm1 = vcmask 130048   ;;  %s3159_s5 = inlined_call_operand.vmem [shape: f32[32,8], index: 5, kind: input, shape index: {}]   ;;  %s3160_s0 = inlined_call_operand.vmem [shape: f32[32,128], index: 0, kind: input, shape index: {}]   ;;  %s3161_s1 = inlined_call_operand.vmem [shape: f32[48,32], index: 1, kind: input, shape index: {}]   ;;  %s3162_s7 = inlined_call_operand.vmem [shape: f32[192,128], index: 7, kind: input, shape index: {}]   ;;  %s3163_s2 = inlined_call_operand.vmem [shape: f32[32,16], index: 2, kind: input, shape index: {}]   ;;  %s3164_s3 = inlined_call_operand.vmem [shape: f32[128,32], index: 3, kind: input, shape index: {}]   ;;  %s3165_s6 = inlined_call_operand.vmem [shape: f32[128,1], index: 6, kind: input, shape index: {}]   ;;  %s3166_s4 = inlined_call_operand.vmem [shape: f32[32,128], index: 4, kind: input, shape index: {}]   ;;  %s3167_s8 = inlined_call_operand.vmem [shape: f32[32,128], index: 8, kind: output, shape index: {}]  }
   0x1   :  { %2151 = vset.pattern.permute.xlu1 %v2271_v0  ;;  %2150 = vset.pattern.permute.xlu0 %v3168_v1  ;;  %v2327_v2 = vld [vmem:[%s3159_s5 + $0x18] sm:$0xff]  ;;  %v2334_v3 = vld [vmem:[%s3159_s5 + $0x10] sm:$0xff]  ;;  %v2339_v4 = vld [vmem:[%s3159_s5 + $0x8] sm:$0xff] }
   0x2   :  { %133 = vperm.xlu1 %2151, %v2327_v2   ;;  %113 = vperm.xlu0 %2150, %v2327_v2   ;;  %v2347_v5 = vld [vmem:[%s3159_s5] sm:$0xff]  ;;  %v2359_v7 = vld [vmem:[%s3160_s0 + $0x8] sm:$0xff]  ;;  %v2367_v9 = vld [vmem:[%s3160_s0 + $0x10] sm:$0xff] }
   0x3   :  { %v2354_v6 = vld [vmem:[%s3160_s0] sm:$0xff]  ;;  %v2378_v12 = vld [vmem:[%s3160_s0 + $0x18] sm:$0xff]  ;;  %v141_v61 = vld [vmem:[%s3161_s1 + $0x8] sm:$0xff] }
   0x4   :  { %v61_v8 = vadd.f32 %v2359_v7, %v2354_v6  ;;  %v140_v10 = vld [vmem:[%s3161_s1] sm:$0xff]  ;;  %v142_v62 = vld [vmem:[%s3161_s1 + $0x10] sm:$0xff]  ;;  %v143_v63 = vld [vmem:[%s3161_s1 + $0x18] sm:$0xff] }
   0x5   :  { %1980 = vmatprep.mubr.msk.f32.mxu0 %vm146_vm0, %v140_v10  ;;  %v2405_v10 = vld [vmem:[%s3162_s7 + $0xb0] sm:$0xff] }
   0x6   :  { %2152 = vset.pattern.permute.xlu1 %v3168_v1  ;;  %108 = vperm.xlu0 %2150, %v2334_v3   ;;  %v62_v11 = vadd.f32 %v61_v8, %v2367_v9 }
   0x7   :  { %103 = vperm.xlu1 %2152, %v2339_v4  }
   0x8   :  { %v63_v13 = vadd.f32 %v62_v11, %v2378_v12 }
   0xa   :  { %2153 = vset.pattern.permute.xlu0 %v2271_v0  ;;  %v64_v14 = vrot.slane %v63_v13, 4 }
   0xb   :  { %129 = vperm.xlu0 %2153, %v2334_v3   ;;  %98 = vperm.xlu1 %2152, %v2347_v5  }
   0xc   :  { %v65_v15 = vadd.f32 %v64_v14, %v63_v13  ;;  %v2411_v13 = vld [vmem:[%s3162_s7 + $0xa8] sm:$0xff] }
   0xe   :  { %v66_v16 = vrot.slane %v65_v15, 2 }
   0xf   :  { %121 = vperm.xlu0 %2153, %v2347_v5   ;;  %2154 = vset.pattern.permute.xlu1 %v2271_v0  ;;  %v2400_v0 = vld [vmem:[%s3162_s7 + $0xb8] sm:$0xff] }
  0x10   :  { %125 = vperm.xlu1 %2154, %v2339_v4   ;;  %v67_v17 = vadd.f32 %v66_v16, %v65_v15  ;;  %v2417_v16 = vld [vmem:[%s3162_s7 + $0xa0] sm:$0xff] }
  0x12   :  { %v68_v18 = vrot.slane %v67_v17, 1 }
  0x14   :  { %v69_v19 = vadd.f32 %v68_v18, %v67_v17 }
  0x16   :  { %v71_v20 = vmul.f32 0.03125, %v69_v19 }
  0x18   :  { %v72_v21 = vsub.f32 %v2354_v6, %v71_v20  ;;  %v73_v22 = vsub.f32 %v2359_v7, %v71_v20  ;;  %v74_v23 = vsub.f32 %v2367_v9, %v71_v20  ;;  %v75_v26 = vsub.f32 %v2378_v12, %v71_v20 }
  0x1a   :  { %v76_v24 = vmul.f32 %v72_v21, %v72_v21  ;;  %v77_v25 = vmul.f32 %v73_v22, %v73_v22  ;;  %v78_v27 = vmul.f32 %v74_v23, %v74_v23  ;;  %v79_v29 = vmul.f32 %v75_v26, %v75_v26 }
  0x1c   :  { %v80_v28 = vadd.f32 %v77_v25, %v76_v24  ;;  %v2432_v24 = vsub.f32 1.0, %v2411_v13  ;;  %v2435_v25 = vsub.f32 1.0, %v2417_v16 }
  0x1e   :  { %v81_v30 = vadd.f32 %v80_v28, %v78_v27 }
  0x20   :  { %v82_v31 = vadd.f32 %v81_v30, %v79_v29  ;;  %v2443_v30 = vld [vmem:[%s3162_s7 + $0x80] sm:$0xff] }
  0x22   :  { %v83_v32 = vrot.slane %v82_v31, 4 }
  0x24   :  { %v84_v33 = vadd.f32 %v83_v32, %v82_v31 }
  0x26   :  { %v85_v34 = vrot.slane %v84_v33, 2 }
  0x28   :  { %v86_v35 = vadd.f32 %v85_v34, %v84_v33 }
  0x2a   :  { %v87_v36 = vrot.slane %v86_v35, 1 }
  0x2c   :  { %v88_v37 = vadd.f32 %v87_v36, %v86_v35  ;;  %v2451_v36 = vld [vmem:[%s3162_s7 + $0x88] sm:$0xff] }
  0x2e   :  { %v89_v38 = vmul.f32 0.03125, %v88_v37 }
  0x30   :  { %v90_v39 = vadd.f32 1e-06, %v89_v38 }
  0x32   :  { %2163 = vrsqrt.f32 %v90_v39 }
  0x3f   :  { %v2164_v40 = vpop.eup %2163 }
  0x40   :  { %v95_v41 = vmul.f32 %v2164_v40, %v75_v26  ;;  %v94_v47 = vmul.f32 %v2164_v40, %v74_v23  ;;  %v93_v50 = vmul.f32 %v2164_v40, %v73_v22  ;;  %v92_v54 = vmul.f32 %v2164_v40, %v72_v21  ;;  %v144_v21 = vld [vmem:[%s3161_s1 + $0x20] sm:$0xff]  ;;  %v145_v22 = vld [vmem:[%s3161_s1 + $0x28] sm:$0xff] }
  0x7d   :  { %v134_v42 = vpop.permute.xlu1 %133  ;;  %v114_v43 = vpop.permute.xlu0 %113 }
  0x7e   :  { %v119_v44 = vmul.f32 %v114_v43, %v95_v41  ;;  %v2459_v41 = vld [vmem:[%s3162_s7 + $0x90] sm:$0xff] }
  0x80   :  { %v139_v45 = vadd.f32 %v134_v42, %v119_v44 }
  0x81   :  { %v109_v46 = vpop.permute.xlu0 %108 }
  0x82   :  { %v104_v48 = vpop.permute.xlu1 %103  ;;  %1972 = vmatprep.subr.mxu0 %v139_v45  ;;  %v118_v49 = vmul.f32 %v109_v46, %v94_v47 }
  0x83   :  { %1973 = vmatpush3.msra.mxu0 %v139_v45  ;;  %v117_v55 = vmul.f32 %v104_v48, %v93_v50  ;;  %v2466_v45 = vld [vmem:[%s3162_s7 + $0x98] sm:$0xff] }
  0x86   :  { %v130_v51 = vpop.permute.xlu0 %129  ;;  %v99_v52 = vpop.permute.xlu1 %98 }
  0x87   :  { %v138_v53 = vadd.f32 %v130_v51, %v118_v49  ;;  %v116_v58 = vmul.f32 %v99_v52, %v92_v54 }
  0x89   :  { %1974 = vmatprep.subr.mxu0 %v138_v53 }
  0x8a   :  { %1975 = vmatpush3.msra.mxu0 %v138_v53  ;;  %v122_v56 = vpop.permute.xlu0 %121 }
  0x8b   :  { %v126_v57 = vpop.permute.xlu1 %125  ;;  %v136_v60 = vadd.f32 %v122_v56, %v116_v58 }
  0x8c   :  { %v137_v59 = vadd.f32 %v126_v57, %v117_v55 }
  0x8e   :  { %1976 = vmatprep.subr.mxu0 %v137_v59 }
  0x8f   :  { %1977 = vmatpush3.msra.mxu0 %v137_v59 }
  0x90   :  { %1978 = vmatprep.subr.mxu0 %v136_v60 }
  0x91   :  { %1979 = vmatpush3.msra.mxu0 %v136_v60 }
  0x92   :  { %1981 = vmatmul.mubr.msk.f32.vlgmr.msra.gmra.mxu0 %vm146_vm0, %v141_v61 }
  0x93   :  { %1983 = vmatprep.mubr.msk.f32.mxu0 %vm146_vm0, %v142_v62 }
  0x96   :  { %1984 = vmatmul.mubr.msk.f32.gmra.mxu0 %vm146_vm0, %v143_v63 }
  0x97   :  { %1986 = vmatprep.mubr.msk.f32.mxu0 %vm146_vm0, %v144_v21 }
  0x9a   :  { %1987 = vmatmul.mubr.msk.f32.gmra.mxu0 %vm146_vm0, %v145_v22 }
 0x152   :  { %v1982_v8 = vpop.f32.mrf.mxu0 }
 0x153   :  { %v305_v11 = vmul.f32 %v1982_v8, %v2400_v0  ;;  %v303_v18 = vmul.f32 %v1982_v8, %v2411_v13 }
 0x154   :  { %v231_v14 = vpop.f32.mrf.mxu0 }
 0x155   :  { %v304_v15 = vmul.f32 %v231_v14, %v2405_v10  ;;  %1989 = vmatprep.subr.mxu1 %v305_v11  ;;  %v302_v20 = vmul.f32 %v231_v14, %v2417_v16 }
 0x156   :  { %v1985_v17 = vpop.f32.mrf.mxu0  ;;  %1990 = vmatpush3.msra.mxu1 %v305_v11 }
 0x157   :  { %1991 = vmatprep.subr.mxu1 %v304_v15  ;;  %264 = vrot.lane.b32.xlu0 %v1985_v17, %s2273_s14  ;;  %v267_v31 = vmul.f32 %v1985_v17, %v2411_v13  ;;  %v275_v42 = vmul.f32 %v1985_v17, %v2432_v24 }
 0x158   :  { %v241_v19 = vpop.f32.mrf.mxu0  ;;  %1992 = vmatpush3.msra.mxu1 %v304_v15 }
 0x159   :  { %1993 = vmatprep.subr.mxu1 %v303_v18  ;;  %262 = vrot.lane.b32.xlu1 %v241_v19, %s2273_s14  ;;  %v266_v27 = vmul.f32 %v241_v19, %v2417_v16  ;;  %v274_v37 = vmul.f32 %v2435_v25, %v241_v19 }
 0x15a   :  { %1994 = vmatpush3.msra.mxu1 %v303_v18  ;;  %v2469_v47 = vpop.f32.mrf.mxu0 }
 0x15b   :  { %1995 = vmatprep.subr.mxu1 %v302_v20 }
 0x15c   :  { %1996 = vmatpush3.msra.mxu1 %v302_v20  ;;  %v2471_v48 = vpop.f32.mrf.mxu0 }
 0x15d   :  { %282 = vrot.lane.b32.xlu0 %v2471_v48, %s2273_s14  ;;  %v286_v14 = vmul.f32 %v2471_v48, %v2417_v16 }
 0x161   :  { %284 = vrot.lane.b32.xlu0 %v2469_v47, %s2273_s14 }
 0x1c9   :  { %v265_v23 = vpop.permute.xlu0 %264 }
 0x1ca   :  { %v269_v28 = vmul.f32 %v265_v23, %v2432_v24  ;;  %v273_v38 = vmul.f32 %v265_v23, %v2411_v13 }
 0x1cb   :  { %v263_v26 = vpop.permute.xlu1 %262 }
 0x1cc   :  { %v268_v29 = vmul.f32 %v263_v26, %v2435_v25  ;;  %v271_v33 = vadd.f32 %v269_v28, %v267_v31  ;;  %v272_v34 = vmul.f32 %v263_v26, %v2417_v16  ;;  %v277_v43 = vadd.f32 %v275_v42, %v273_v38  ;;  %v39_v38 = vld [vmem:[%s3162_s7 + $0x10] sm:$0xff] }
 0x1ce   :  { %v270_v32 = vadd.f32 %v268_v29, %v266_v27  ;;  %v279_v39 = vmul.f32 %v271_v33, %v2451_v36  ;;  %v276_v40 = vadd.f32 %v274_v37, %v272_v34  ;;  %v281_v46 = vmul.f32 %v277_v43, %v2466_v45 }
 0x1cf   :  { %v2493_v11 = vpop.permute.xlu0 %282 }
 0x1d0   :  { %v278_v35 = vmul.f32 %v270_v32, %v2443_v30  ;;  %v280_v44 = vmul.f32 %v276_v40, %v2459_v41  ;;  %v288_v15 = vmul.f32 %v2493_v11, %v2435_v25 }
 0x1d2   :  { %306 = vxpose.xlu1.b32.start [1/4] (short) %v278_v35, 128  ;;  %v290_v17 = vadd.f32 %v288_v15, %v286_v14 }
 0x1d4   :  { %v298_v18 = vmul.f32 %v290_v17, %v2443_v30  ;;  %v45_v17 = vld [vmem:[%s3162_s7 + $0x40] sm:$0xff] }
 0x1d6   :  { %307 = vxpose.xlu1.b32.cont [2/4] (short) %v279_v39, 128  ;;  %2053 = vmatprep.mubr.f32.mxu0 %v298_v18  ;;  %v43_v39 = vld [vmem:[%s3162_s7 + $0x30] sm:$0xff]  ;;  %v50_v18 = vld [vmem:[%s3162_s7 + $0x68] sm:$0xff] }
 0x1da   :  { %308 = vxpose.xlu1.b32.cont [3/4] (short) %v280_v44, 128  ;;  %v37_v44 = vld [vmem:[%s3162_s7] sm:$0xff] }
 0x1de   :  { %309 = vxpose.xlu1.b32.end [4/4] (short) %v281_v46, 128  ;;  %v40_v46 = vld [vmem:[%s3162_s7 + $0x18] sm:$0xff] }
 0x24e   :  { %v322_v49 = vpop.trf.xlu1 }
 0x24f   :  { %1997 = vmatprep.mubr.msk.f32.mxu1 %vm146_vm0, %v322_v49  ;;  %v42_v49 = vld [vmem:[%s3162_s7 + $0x28] sm:$0xff] }
 0x252   :  { %v323_v50 = vpop.trf.xlu1 }
 0x253   :  { %1998 = vmatmul.mubr.msk.f32.vlgmr.msra.gmra.mxu1 %vm146_vm0, %v323_v50  ;;  %v41_v50 = vld [vmem:[%s3162_s7 + $0x20] sm:$0xff] }
 0x256   :  { %v324_v51 = vpop.trf.xlu1 }
 0x257   :  { %2000 = vmatprep.mubr.msk.f32.mxu1 %vm146_vm0, %v324_v51  ;;  %v44_v51 = vld [vmem:[%s3162_s7 + $0x38] sm:$0xff] }
 0x25a   :  { %v325_v52 = vpop.trf.xlu1 }
 0x25b   :  { %2001 = vmatmul.mubr.msk.f32.gmra.mxu1 %vm146_vm0, %v325_v52  ;;  %v49_v52 = vld [vmem:[%s3162_s7 + $0x60] sm:$0xff] }
 0x25e   :  { %v326_v53 = vpop.trf.xlu1 }
 0x25f   :  { %2003 = vmatprep.mubr.msk.f32.mxu1 %vm146_vm0, %v326_v53 }
 0x262   :  { %v327_v54 = vpop.trf.xlu1 }
 0x263   :  { %2004 = vmatmul.mubr.msk.f32.gmra.mxu1 %vm146_vm0, %v327_v54 }
 0x266   :  { %v328_v55 = vpop.trf.xlu1 }
 0x267   :  { %2006 = vmatprep.mubr.msk.f32.mxu1 %vm146_vm0, %v328_v55 }
 0x26a   :  { %v329_v56 = vpop.trf.xlu1 }
 0x26b   :  { %2007 = vmatmul.mubr.msk.f32.gmra.mxu1 %vm146_vm0, %v329_v56 }
 0x26e   :  { %v330_v57 = vpop.trf.xlu1 }
 0x26f   :  { %2009 = vmatprep.mubr.msk.f32.mxu1 %vm146_vm0, %v330_v57 }
 0x272   :  { %v331_v58 = vpop.trf.xlu1 }
 0x273   :  { %2010 = vmatmul.mubr.msk.f32.gmra.mxu1 %vm146_vm0, %v331_v58  ;;  %v38_v58 = vld [vmem:[%s3162_s7 + $0x8] sm:$0xff] }
 0x276   :  { %v332_v59 = vpop.trf.xlu1 }
 0x277   :  { %2012 = vmatprep.mubr.msk.f32.mxu1 %vm146_vm0, %v332_v59 }
 0x27a   :  { %v333_v60 = vpop.trf.xlu1 }
 0x27b   :  { %2013 = vmatmul.mubr.msk.f32.gmra.mxu1 %vm146_vm0, %v333_v60  ;;  %v46_v60 = vld [vmem:[%s3162_s7 + $0x48] sm:$0xff] }
 0x27e   :  { %v334_v61 = vpop.trf.xlu1 }
 0x27f   :  { %2015 = vmatprep.mubr.msk.f32.mxu1 %vm146_vm0, %v334_v61 }
 0x282   :  { %v335_v62 = vpop.trf.xlu1 }
 0x283   :  { %2016 = vmatmul.mubr.msk.f32.gmra.mxu1 %vm146_vm0, %v335_v62 }
 0x286   :  { %v336_v63 = vpop.trf.xlu1 }
 0x287   :  { %2018 = vmatprep.mubr.msk.f32.mxu1 %vm146_vm0, %v336_v63 }
 0x28a   :  { %v337_v8 = vpop.trf.xlu1 }
 0x28b   :  { %2019 = vmatmul.mubr.msk.f32.gmra.mxu1 %vm146_vm0, %v337_v8 }
 0x313   :  { %v1999_v19 = vpop.f32.mrf.mxu1 }
 0x314   :  { %v532_v59 = vmul.f32 0.35355338, %v1999_v19  ;;  %v52_v19 = vld [vmem:[%s3162_s7 + $0x78] sm:$0xff] }
 0x315   :  { %v452_v20 = vpop.f32.mrf.mxu1 }
 0x316   :  { %v531_v54 = vmul.f32 0.35355338, %v452_v20 }
 0x31b   :  { %v2002_v21 = vpop.f32.mrf.mxu1 }
 0x31c   :  { %v534_v55 = vmul.f32 0.35355338, %v2002_v21 }
 0x31d   :  { %v462_v22 = vpop.f32.mrf.mxu1 }
 0x31e   :  { %v533_v40 = vmul.f32 0.35355338, %v462_v22 }
 0x320   :  { %v2532_v63 = vadd.f32 %v533_v40, %v39_v38 }
 0x323   :  { %v2005_v23 = vpop.f32.mrf.mxu1 }
 0x324   :  { %v536_v56 = vmul.f32 0.35355338, %v2005_v23 }
 0x325   :  { %v472_v26 = vpop.f32.mrf.mxu1 }
 0x326   :  { %v535_v42 = vmul.f32 0.35355338, %v472_v26 }
 0x328   :  { %v2534_v8 = vadd.f32 %v535_v42, %v41_v50  ;;  %v2564_v42 = vadd.f32 %v532_v59, %v38_v58 }
 0x32b   :  { %v2008_v27 = vpop.f32.mrf.mxu1 }
 0x32c   :  { %v538_v43 = vmul.f32 0.35355338, %v2008_v27  ;;  %v2547_v27 = vadd.f32 %v531_v54, %v37_v44 }
 0x32d   :  { %v482_v28 = vpop.f32.mrf.mxu1 }
 0x32e   :  { %v537_v35 = vmul.f32 0.35355338, %v482_v28  ;;  %v2536_v14 = vadd.f32 %v538_v43, %v44_v51  ;;  %v2549_v28 = vadd.f32 %v534_v55, %v40_v46  ;;  %v563_v43 = vmax.f32 %v2547_v27, %v2534_v8 }
 0x330   :  { %v2524_v57 = vadd.f32 %v537_v35, %v43_v39  ;;  %v566_v44 = vmax.f32 %v2549_v28, %v2536_v14 }
 0x333   :  { %v2011_v29 = vpop.f32.mrf.mxu1 }
 0x334   :  { %v540_v15 = vmul.f32 0.35355338, %v2011_v29  ;;  %v2551_v29 = vadd.f32 %v536_v56, %v42_v49 }
 0x335   :  { %v492_v31 = vpop.f32.mrf.mxu1 }
 0x336   :  { %v539_v61 = vmul.f32 0.35355338, %v492_v31  ;;  %v565_v31 = vmax.f32 %v2532_v63, %v2524_v57  ;;  %v556_v46 = vadd.f32 %v540_v15, %v46_v60 }
 0x338   :  { %v568_v54 = vmax.f32 %v565_v31, %v566_v44 }
 0x33b   :  { %v2014_v32 = vpop.f32.mrf.mxu1 }
 0x33c   :  { %v542_v21 = vmul.f32 0.35355338, %v2014_v32  ;;  %v47_v32 = vld [vmem:[%s3162_s7 + $0x50] sm:$0xff] }
 0x33d   :  { %v502_v33 = vpop.f32.mrf.mxu1 }
 0x33e   :  { %v541_v22 = vmul.f32 0.35355338, %v502_v33  ;;  %v51_v33 = vld [vmem:[%s3162_s7 + $0x70] sm:$0xff] }
 0x340   :  { %v557_v50 = vadd.f32 %v541_v22, %v47_v32 }
 0x343   :  { %v2017_v34 = vpop.f32.mrf.mxu1 }
 0x344   :  { %v544_v62 = vmul.f32 0.35355338, %v2017_v34  ;;  %v48_v34 = vld [vmem:[%s3162_s7 + $0x58] sm:$0xff] }
 0x345   :  { %v512_v37 = vpop.f32.mrf.mxu1  ;;  %v558_v49 = vadd.f32 %v542_v21, %v48_v34 }
 0x346   :  { %v543_v53 = vmul.f32 0.35355338, %v512_v37  ;;  %v555_v37 = vadd.f32 %v539_v61, %v45_v17  ;;  %v560_v38 = vadd.f32 %v544_v62, %v50_v18 }
 0x348   :  { %v559_v23 = vadd.f32 %v543_v53, %v49_v52  ;;  %v564_v53 = vmax.f32 %v2564_v42, %v2551_v29  ;;  %v577_v55 = vmax.f32 %v556_v46, %v560_v38 }
 0x34a   :  { %v576_v51 = vmax.f32 %v555_v37, %v559_v23  ;;  %v567_v58 = vmax.f32 %v563_v43, %v564_v53 }
 0x34b   :  { %v2020_v20 = vpop.f32.mrf.mxu1 }
 0x34c   :  { %v546_v26 = vmul.f32 0.35355338, %v2020_v20  ;;  %v580_v59 = vmax.f32 %v576_v51, %v577_v55  ;;  %v569_v17 = vmax.f32 %v567_v58, %v568_v54 }
 0x34d   :  { %v522_v35 = vpop.f32.mrf.mxu1 }
 0x34e   :  { %v562_v39 = vadd.f32 %v546_v26, %v52_v19  ;;  %v545_v40 = vmul.f32 0.35355338, %v522_v35  ;;  %v570_v20 = vrot.slane %v569_v17, 4 }
 0x350   :  { %v561_v52 = vadd.f32 %v545_v40, %v51_v33  ;;  %v579_v56 = vmax.f32 %v558_v49, %v562_v39  ;;  %v571_v15 = vmax.f32 %v569_v17, %v570_v20 }
 0x352   :  { %v578_v61 = vmax.f32 %v557_v50, %v561_v52  ;;  %v572_v34 = vrot.slane %v571_v15, 2 }
 0x354   :  { %v581_v62 = vmax.f32 %v578_v61, %v579_v56  ;;  %v573_v31 = vmax.f32 %v571_v15, %v572_v34 }
 0x356   :  { %v582_v18 = vmax.f32 %v580_v59, %v581_v62  ;;  %v574_v51 = vrot.slane %v573_v31, 1 }
 0x358   :  { %v583_v19 = vrot.slane %v582_v18, 4  ;;  %v575_v61 = vmax.f32 %v573_v31, %v574_v51  ;;  %v285_v31 = vpop.permute.xlu0 %284 }
 0x35a   :  { %v584_v26 = vmax.f32 %v582_v18, %v583_v19 }
 0x35c   :  { %v585_v60 = vrot.slane %v584_v26, 2 }
 0x35e   :  { %v586_v21 = vmax.f32 %v584_v26, %v585_v60 }
 0x360   :  { %v587_v22 = vrot.slane %v586_v21, 1 }
 0x362   :  { %v588_v32 = vmax.f32 %v586_v21, %v587_v22 }
 0x364   :  { %v619_v33 = vsub.f32 %v561_v52, %v588_v32  ;;  %v620_v35 = vsub.f32 %v562_v39, %v588_v32  ;;  %v618_v40 = vsub.f32 %v560_v38, %v588_v32  ;;  %v617_v43 = vsub.f32 %v559_v23, %v588_v32 }
 0x365   :  { %v616_v54 = vsub.f32 %v558_v49, %v588_v32  ;;  %v615_v56 = vsub.f32 %v557_v50, %v588_v32  ;;  %v614_v59 = vsub.f32 %v556_v46, %v588_v32  ;;  %v613_v52 = vsub.f32 %v555_v37, %v588_v32 }
 0x366   :  { %v635_v44 = vmul.f32 1.442695, %v620_v35  ;;  %v633_v1 = vmul.f32 1.442695, %v619_v33  ;;  %v631_v53 = vmul.f32 1.442695, %v618_v40  ;;  %v596_v38 = vsub.f32 %v2536_v14, %v575_v61 }
 0x367   :  { %v629_v55 = vmul.f32 1.442695, %v617_v43  ;;  %v627_v58 = vmul.f32 1.442695, %v616_v54  ;;  %v625_v62 = vmul.f32 1.442695, %v615_v56  ;;  %v595_v23 = vsub.f32 %v2524_v57, %v575_v61 }
 0x368   :  { %2165 = vpow2.f32 %v635_v44  ;;  %v623_v39 = vmul.f32 1.442695, %v614_v59  ;;  %v621_v17 = vmul.f32 1.442695, %v613_v52  ;;  %v611_v49 = vmul.f32 1.442695, %v596_v38 }
 0x369   :  { %2167 = vpow2.f32 %v633_v1  ;;  %v594_v1 = vsub.f32 %v2551_v29, %v575_v61  ;;  %v609_v18 = vmul.f32 1.442695, %v595_v23  ;;  %v593_v46 = vsub.f32 %v2534_v8, %v575_v61 }
 0x36a   :  { %2169 = vpow2.f32 %v631_v53  ;;  %v592_v14 = vsub.f32 %v2549_v28, %v575_v61  ;;  %v591_v29 = vsub.f32 %v2532_v63, %v575_v61  ;;  %v590_v8 = vsub.f32 %v2564_v42, %v575_v61 }
 0x36b   :  { %2171 = vpow2.f32 %v629_v55  ;;  %v607_v37 = vmul.f32 1.442695, %v594_v1  ;;  %v605_v20 = vmul.f32 1.442695, %v593_v46  ;;  %v589_v28 = vsub.f32 %v2547_v27, %v575_v61 }
 0x36c   :  { %2173 = vpow2.f32 %v627_v58  ;;  %v603_v60 = vmul.f32 1.442695, %v592_v14  ;;  %v601_v21 = vmul.f32 1.442695, %v591_v29  ;;  %v599_v34 = vmul.f32 1.442695, %v590_v8 }
 0x36d   :  { %2175 = vpow2.f32 %v625_v62  ;;  %v597_v32 = vmul.f32 1.442695, %v589_v28  ;;  %v287_v44 = vmul.f32 %v2469_v47, %v2411_v13  ;;  %v289_v43 = vmul.f32 %v285_v31, %v2432_v24  ;;  %v971_v29 = vld [vmem:[%s3165_s6 + $0x68] sm:$0xff]  ;;  %v960_v8 = vld [vmem:[%s3165_s6 + $0x10] sm:$0xff] }
 0x36e   :  { %2177 = vpow2.f32 %v623_v39  ;;  %v294_v53 = vmul.f32 %v2435_v25, %v2471_v48  ;;  %v292_v54 = vmul.f32 %v2493_v11, %v2417_v16  ;;  %v295_v56 = vmul.f32 %v2469_v47, %v2432_v24  ;;  %v742_v47 = vld [vmem:[%s3163_s2] sm:$0xff] }
 0x36f   :  { %2179 = vpow2.f32 %v621_v17  ;;  %v291_v61 = vadd.f32 %v289_v43, %v287_v44  ;;  %v293_v58 = vmul.f32 %v285_v31, %v2411_v13  ;;  %2066 = vmatprep.mubr.msk.f32.mxu1 %vm746_vm1, %v742_v47  ;;  %v2274_v39 = vmov 4  }
 0x370   :  { %2181 = vpow2.f32 %v611_v49  ;;  %v296_v62 = vadd.f32 %v294_v53, %v292_v54  ;;  %2155 = vset.pattern.permute.xlu0 %v2274_v39  ;;  %v2275_v38 = vmov 3  }
 0x371   :  { %2183 = vpow2.f32 %v609_v18  ;;  %v297_v25 = vadd.f32 %v295_v56, %v293_v58  ;;  %v299_v48 = vmul.f32 %v291_v61, %v2451_v36  ;;  %2157 = vset.pattern.permute.xlu1 %v2275_v38  ;;  %849 = vperm.xlu0 %2155, %v2347_v5   ;;  %v963_v61 = vld [vmem:[%s3165_s6 + $0x28] sm:$0xff] }
 0x372   :  { %2185 = vpow2.f32 %v607_v37  ;;  %v300_v11 = vmul.f32 %v296_v62, %v2459_v41  ;;  %931 = vperm.xlu1 %2157, %v2334_v3  }
 0x373   :  { %2187 = vpow2.f32 %v605_v20  ;;  %v301_v24 = vmul.f32 %v297_v25, %v2466_v45  ;;  %v972_v20 = vld [vmem:[%s3165_s6 + $0x70] sm:$0xff]  ;;  %v961_v25 = vld [vmem:[%s3165_s6 + $0x18] sm:$0xff] }
 0x374   :  { %2189 = vpow2.f32 %v603_v60  ;;  %v969_v60 = vld [vmem:[%s3165_s6 + $0x58] sm:$0xff] }
 0x375   :  { %v2166_v50 = vpop.eup %2165  ;;  %2191 = vpow2.f32 %v601_v21  ;;  %853 = vperm.xlu0 %2155, %v2339_v4   ;;  %v968_v21 = vld [vmem:[%s3165_s6 + $0x50] sm:$0xff] }
 0x376   :  { %2021 = vmatprep.subr.mxu0 %v2166_v50  ;;  %v2168_v19 = vpop.eup %2167  ;;  %2193 = vpow2.f32 %v599_v34 }
 0x377   :  { %2022 = vmatpush3.msra.mxu0 %v2166_v50  ;;  %v2170_v57 = vpop.eup %2169  ;;  %2195 = vpow2.f32 %v597_v32 }
 0x378   :  { %2023 = vmatprep.subr.mxu0 %v2168_v19  ;;  %v2172_v26 = vpop.eup %2171 }
 0x379   :  { %2024 = vmatpush3.msra.mxu0 %v2168_v19  ;;  %v2174_v15 = vpop.eup %2173  ;;  %857 = vperm.xlu0 %2155, %v2334_v3  }
 0x37a   :  { %2025 = vmatprep.subr.mxu0 %v2170_v57  ;;  %v2176_v22 = vpop.eup %2175 }
 0x37b   :  { %2026 = vmatpush3.msra.mxu0 %v2170_v57  ;;  %v2178_v63 = vpop.eup %2177  ;;  %v743_v57 = vld [vmem:[%s3163_s2 + $0x8] sm:$0xff] }
 0x37c   :  { %2027 = vmatprep.subr.mxu0 %v2172_v26  ;;  %v2180_v33 = vpop.eup %2179 }
 0x37d   :  { %2028 = vmatpush3.msra.mxu0 %v2172_v26  ;;  %v2182_v42 = vpop.eup %2181  ;;  %861 = vperm.xlu0 %2155, %v2327_v2   ;;  %v970_v26 = vld [vmem:[%s3165_s6 + $0x60] sm:$0xff] }
 0x37e   :  { %2029 = vmatprep.subr.mxu0 %v2174_v15  ;;  %v2184_v35 = vpop.eup %2183 }
 0x37f   :  { %2030 = vmatpush3.msra.mxu0 %v2174_v15  ;;  %v2186_v27 = vpop.eup %2185  ;;  %v958_v15 = vld [vmem:[%s3165_s6] sm:$0xff] }
 0x380   :  { %2031 = vmatprep.subr.mxu0 %v2176_v22  ;;  %v2188_v40 = vpop.eup %2187 }
 0x381   :  { %2032 = vmatpush3.msra.mxu0 %v2176_v22  ;;  %v2190_v51 = vpop.eup %2189  ;;  %v967_v22 = vld [vmem:[%s3165_s6 + $0x48] sm:$0xff] }
 0x382   :  { %2033 = vmatprep.subr.mxu0 %v2178_v63  ;;  %v2192_v55 = vpop.eup %2191 }
 0x383   :  { %2034 = vmatpush3.msra.mxu0 %v2178_v63  ;;  %v2194_v59 = vpop.eup %2193  ;;  %v966_v63 = vld [vmem:[%s3165_s6 + $0x40] sm:$0xff] }
 0x384   :  { %2035 = vmatprep.subr.mxu0 %v2180_v33  ;;  %v2196_v52 = vpop.eup %2195 }
 0x385   :  { %2036 = vmatpush3.msra.mxu0 %v2180_v33 }
 0x386   :  { %2037 = vmatprep.subr.mxu0 %v2182_v42 }
 0x387   :  { %2038 = vmatpush3.msra.mxu0 %v2182_v42  ;;  %v965_v42 = vld [vmem:[%s3165_s6 + $0x38] sm:$0xff] }
 0x388   :  { %2039 = vmatprep.subr.mxu0 %v2184_v35 }
 0x389   :  { %2040 = vmatpush3.msra.mxu0 %v2184_v35 }
 0x38a   :  { %2041 = vmatprep.subr.mxu0 %v2186_v27 }
 0x38b   :  { %2042 = vmatpush3.msra.mxu0 %v2186_v27 }
 0x38c   :  { %2043 = vmatprep.subr.mxu0 %v2188_v40 }
 0x38d   :  { %2044 = vmatpush3.msra.mxu0 %v2188_v40 }
 0x38e   :  { %2045 = vmatprep.subr.mxu0 %v2190_v51 }
 0x38f   :  { %2046 = vmatpush3.msra.mxu0 %v2190_v51  ;;  %v964_v51 = vld [vmem:[%s3165_s6 + $0x30] sm:$0xff] }
 0x390   :  { %2047 = vmatprep.subr.mxu0 %v2192_v55 }
 0x391   :  { %2048 = vmatpush3.msra.mxu0 %v2192_v55 }
 0x392   :  { %2049 = vmatprep.subr.mxu0 %v2194_v59 }
 0x393   :  { %2050 = vmatpush3.msra.mxu0 %v2194_v59 }
 0x394   :  { %2051 = vmatprep.subr.mxu0 %v2196_v52 }
 0x395   :  { %2052 = vmatpush3.msra.mxu0 %v2196_v52 }
 0x396   :  { %2054 = vmatmul.mubr.f32.vlgmr.msra.gmra.mxu0 %v299_v48 }
 0x397   :  { %2056 = vmatprep.mubr.f32.mxu0 %v300_v11 }
 0x39a   :  { %2057 = vmatmul.mubr.f32.gmra.mxu0 %v301_v24  ;;  %v959_v24 = vld [vmem:[%s3165_s6 + $0x8] sm:$0xff] }
 0x39b   :  { %2059 = vmatprep.mubr.f32.mxu0 %v2443_v30  ;;  %v3186_v30 = vmov 0  }
 0x39c   :  { %2160 = vset.pattern.permute.xlu1 %v3186_v30 }
 0x39d   :  { %986 = vperm.xlu1 %2160, %v960_v8  }
 0x39e   :  { %2060 = vmatmul.mubr.f32.gmra.mxu0 %v2451_v36  ;;  %v2276_v36 = vmov 2  }
 0x39f   :  { %2156 = vset.pattern.permute.xlu0 %v2276_v36 }
 0x3a0   :  { %915 = vperm.xlu0 %2156, %v2327_v2  }
 0x3a1   :  { %976 = vperm.xlu1 %2160, %v958_v15  }
 0x3a4   :  { %911 = vperm.xlu0 %2156, %v2334_v3  }
 0x3a8   :  { %907 = vperm.xlu0 %2156, %v2339_v4  }
 0x3ac   :  { %903 = vperm.xlu0 %2156, %v2347_v5  }
 0x3b0   :  { %2158 = vset.pattern.permute.xlu0 %v2275_v38 }
 0x3b1   :  { %935 = vperm.xlu0 %2158, %v2327_v2  }
 0x3b5   :  { %927 = vperm.xlu0 %2158, %v2339_v4  }
 0x3b9   :  { %923 = vperm.xlu0 %2158, %v2347_v5  }
 0x3bd   :  { %2159 = vset.pattern.permute.xlu0 %v3186_v30 }
 0x3ec   :  { %v850_v28 = vpop.permute.xlu0 %849 }
 0x3f0   :  { %v854_v34 = vpop.permute.xlu0 %853 }
 0x3f4   :  { %v858_v40 = vpop.permute.xlu0 %857 }
 0x3f8   :  { %v862_v56 = vpop.permute.xlu0 %861 }
 0x456   :  { %v2055_v41 = vpop.f32.mrf.mxu0 }
 0x457   :  { %v733_v50 = vmul.f32 %v2055_v41, %v2411_v13  ;;  %v942_v13 = vld [vmem:[%s3164_s3] sm:$0xff] }
 0x458   :  { %v703_v45 = vpop.f32.mrf.mxu0 }
 0x459   :  { %v732_v4 = vmul.f32 %v703_v45, %v2417_v16  ;;  %v973_v16 = vld [vmem:[%s3165_s6 + $0x78] sm:$0xff] }
 0x45a   :  { %v2058_v23 = vpop.f32.mrf.mxu0  ;;  %1051 = vperm.xlu0 %2159, %v973_v16  }
 0x45b   :  { %v735_v1 = vmul.f32 %v2058_v23, %v2400_v0  ;;  %v744_v0 = vld [vmem:[%s3163_s2 + $0x10] sm:$0xff] }
 0x45c   :  { %v713_v17 = vpop.f32.mrf.mxu0 }
 0x45d   :  { %v734_v2 = vmul.f32 %v713_v17, %v2405_v10  ;;  %v737_v18 = vadd.f32 %v735_v1, %v733_v50  ;;  %v745_v10 = vld [vmem:[%s3163_s2 + $0x18] sm:$0xff] }
 0x45e   :  { %v2061_v49 = vpop.f32.mrf.mxu0  ;;  %1046 = vperm.xlu0 %2159, %v972_v20  }
 0x45f   :  { %2197 = vrcp.f32 %v2061_v49  ;;  %v736_v46 = vadd.f32 %v734_v2, %v732_v4 }
 0x460   :  { %v723_v3 = vpop.f32.mrf.mxu0 }
 0x461   :  { %2199 = vrcp.f32 %v723_v3 }
 0x462   :  { %1041 = vperm.xlu0 %2159, %v971_v29  }
 0x466   :  { %1036 = vperm.xlu0 %2159, %v970_v26  }
 0x46a   :  { %1031 = vperm.xlu0 %2159, %v969_v60  }
 0x46c   :  { %v2198_v5 = vpop.eup %2197 }
 0x46d   :  { %v741_v19 = vmul.f32 %v2198_v5, %v737_v18 }
 0x46e   :  { %v2200_v37 = vpop.eup %2199  ;;  %1026 = vperm.xlu0 %2159, %v968_v21  }
 0x46f   :  { %2062 = vmatprep.subr.mxu1 %v741_v19  ;;  %v739_v14 = vmul.f32 %v2200_v37, %v736_v46  ;;  %v916_v46 = vpop.permute.xlu0 %915 }
 0x470   :  { %2063 = vmatpush3.msra.mxu1 %v741_v19 }
 0x471   :  { %2064 = vmatprep.subr.mxu1 %v739_v14 }
 0x472   :  { %2065 = vmatpush3.msra.mxu1 %v739_v14  ;;  %1021 = vperm.xlu0 %2159, %v967_v22  }
 0x473   :  { %2067 = vmatmul.mubr.msk.f32.vlgmr.msra.gmra.mxu1 %vm746_vm1, %v743_v57  ;;  %v912_v57 = vpop.permute.xlu0 %911 }
 0x474   :  { %2069 = vmatprep.mubr.msk.f32.mxu1 %vm746_vm1, %v744_v0 }
 0x476   :  { %1016 = vperm.xlu0 %2159, %v966_v63  }
 0x477   :  { %2070 = vmatmul.mubr.msk.f32.gmra.mxu1 %vm746_vm1, %v745_v10 }
 0x478   :  { %2080 = vmatprep.mubr.msk.f32.mxu1 %vm146_vm0, %v942_v13  ;;  %v908_v13 = vpop.permute.xlu0 %907 }
 0x47a   :  { %1011 = vperm.xlu0 %2159, %v965_v42  }
 0x47c   :  { %v904_v16 = vpop.permute.xlu0 %903 }
 0x47e   :  { %1006 = vperm.xlu0 %2159, %v964_v51   ;;  %v945_v51 = vld [vmem:[%s3164_s3 + $0x18] sm:$0xff] }
 0x480   :  { %v936_v20 = vpop.permute.xlu0 %935 }
 0x482   :  { %1001 = vperm.xlu0 %2159, %v963_v61   ;;  %v950_v61 = vld [vmem:[%s3164_s3 + $0x40] sm:$0xff] }
 0x484   :  { %v928_v22 = vpop.permute.xlu0 %927 }
 0x533   :  { %v2068_v32 = vpop.f32.mrf.mxu1 }
 0x534   :  { %v845_v35 = vadd.f32 %v2068_v32, %v2359_v7 }
 0x535   :  { %v825_v33 = vpop.f32.mrf.mxu1 }
 0x536   :  { %v844_v27 = vadd.f32 %v825_v33, %v2354_v6  ;;  %v2673_v53 = vadd.f32 %v854_v34, %v845_v35  ;;  %v932_v34 = vpop.permute.xlu1 %931 }
 0x537   :  { %v2071_v31 = vpop.f32.mrf.mxu1 }
 0x538   :  { %v2668_v44 = vadd.f32 %v850_v28, %v844_v27  ;;  %3188 = vst [vmem:[#allocation3_spill] sm:$0xff] %v2673_v53  ;;  %v847_v54 = vadd.f32 %v2071_v31, %v2378_v12  ;;  %v924_v27 = vpop.permute.xlu0 %923 }
 0x539   :  { %v835_v43 = vpop.f32.mrf.mxu1 }
 0x53a   :  { %3187 = vst [vmem:[#allocation2_spill] sm:$0xff] %v2668_v44  ;;  %v846_v55 = vadd.f32 %v835_v43, %v2367_v9  ;;  %v868_v7 = vadd.f32 %v2673_v53, %v2668_v44  ;;  %v2684_v58 = vadd.f32 %v862_v56, %v847_v54  ;;  %v962_v9 = vld [vmem:[%s3165_s6 + $0x20] sm:$0xff]  ;;  %v944_v43 = vld [vmem:[%s3164_s3 + $0x10] sm:$0xff]  ;;  %v949_v56 = vld [vmem:[%s3164_s3 + $0x38] sm:$0xff] }
 0x53b   :  { %996 = vperm.xlu0 %2159, %v962_v9   ;;  %v946_v54 = vld [vmem:[%s3164_s3 + $0x20] sm:$0xff]  ;;  %v953_v9 = vld [vmem:[%s3164_s3 + $0x58] sm:$0xff] }
 0x53c   :  { %v2679_v6 = vadd.f32 %v858_v40, %v846_v55  ;;  %3190 = vst [vmem:[#allocation5_spill] sm:$0xff] %v2684_v58  ;;  %v943_v40 = vld [vmem:[%s3164_s3 + $0x8] sm:$0xff] }
 0x53d   :  { %v947_v55 = vld [vmem:[%s3164_s3 + $0x28] sm:$0xff] }
 0x53e   :  { %3189 = vst [vmem:[#allocation4_spill] sm:$0xff] %v2679_v6  ;;  %v869_v59 = vadd.f32 %v868_v7, %v2679_v6  ;;  %v948_v7 = vld [vmem:[%s3164_s3 + $0x30] sm:$0xff] }
 0x53f   :  { %991 = vperm.xlu0 %2159, %v961_v25   ;;  %v956_v25 = vld [vmem:[%s3164_s3 + $0x70] sm:$0xff] }
 0x540   :  { %v870_v62 = vadd.f32 %v869_v59, %v2684_v58  ;;  %v951_v59 = vld [vmem:[%s3164_s3 + $0x48] sm:$0xff] }
 0x542   :  { %v871_v12 = vrot.slane %v870_v62, 4 }
 0x543   :  { %981 = vperm.xlu0 %2159, %v959_v24  }
 0x544   :  { %v872_v52 = vadd.f32 %v871_v12, %v870_v62  ;;  %v952_v62 = vld [vmem:[%s3164_s3 + $0x50] sm:$0xff]  ;;  %v954_v12 = vld [vmem:[%s3164_s3 + $0x60] sm:$0xff] }
 0x546   :  { %v873_v48 = vrot.slane %v872_v52, 2 }
 0x548   :  { %v874_v11 = vadd.f32 %v873_v48, %v872_v52  ;;  %v955_v52 = vld [vmem:[%s3164_s3 + $0x68] sm:$0xff]  ;;  %v957_v48 = vld [vmem:[%s3164_s3 + $0x78] sm:$0xff] }
 0x54a   :  { %v875_v47 = vrot.slane %v874_v11, 1 }
 0x54c   :  { %v876_v39 = vadd.f32 %v875_v47, %v874_v11  ;;  %v2761_v11 = vpop.permute.xlu0 %1051 }
 0x54e   :  { %v877_v38 = vmul.f32 0.03125, %v876_v39 }
 0x550   :  { %v878_v30 = vsub.f32 %v2668_v44, %v877_v38  ;;  %v879_v36 = vsub.f32 %v2673_v53, %v877_v38  ;;  %v880_v41 = vsub.f32 %v2679_v6, %v877_v38  ;;  %v881_v45 = vsub.f32 %v2684_v58, %v877_v38  ;;  %v2763_v24 = vpop.permute.xlu0 %1046 }
 0x552   :  { %v882_v23 = vmul.f32 %v878_v30, %v878_v30  ;;  %v883_v17 = vmul.f32 %v879_v36, %v879_v36  ;;  %v884_v49 = vmul.f32 %v880_v41, %v880_v41  ;;  %v885_v1 = vmul.f32 %v881_v45, %v881_v45 }
 0x554   :  { %v886_v3 = vadd.f32 %v883_v17, %v882_v23  ;;  %v2765_v47 = vpop.permute.xlu0 %1041 }
 0x556   :  { %v887_v50 = vadd.f32 %v886_v3, %v884_v49 }
 0x558   :  { %v888_v2 = vadd.f32 %v887_v50, %v885_v1  ;;  %v2767_v39 = vpop.permute.xlu0 %1036  ;;  %v987_v1 = vpop.permute.xlu1 %986 }
 0x55a   :  { %v889_v4 = vrot.slane %v888_v2, 4 }
 0x55c   :  { %v890_v18 = vadd.f32 %v889_v4, %v888_v2  ;;  %v2769_v38 = vpop.permute.xlu0 %1031  ;;  %v977_v4 = vpop.permute.xlu1 %976 }
 0x55e   :  { %v891_v5 = vrot.slane %v890_v18, 2 }
 0x560   :  { %v892_v19 = vadd.f32 %v891_v5, %v890_v18  ;;  %v1679_v18 = vld [vmem:[%s3166_s4] sm:$0xff] }
 0x561   :  { %2136 = vmatprep.mubr.f32.mxu0 %v1679_v18 }
 0x562   :  { %v893_v37 = vrot.slane %v892_v19, 1 }
 0x564   :  { %v894_v14 = vadd.f32 %v893_v37, %v892_v19 }
 0x566   :  { %v895_v0 = vmul.f32 0.03125, %v894_v14 }
 0x568   :  { %v896_v10 = vadd.f32 1e-06, %v895_v0 }
 0x56a   :  { %2201 = vrsqrt.f32 %v896_v10 }
 0x577   :  { %v2202_v29 = vpop.eup %2201 }
 0x578   :  { %v901_v26 = vmul.f32 %v2202_v29, %v881_v45  ;;  %v900_v60 = vmul.f32 %v2202_v29, %v880_v41  ;;  %v899_v8 = vmul.f32 %v2202_v29, %v879_v36  ;;  %v898_v28 = vmul.f32 %v2202_v29, %v878_v30  ;;  %v2771_v30 = vpop.permute.xlu0 %1026 }
 0x57a   :  { %v921_v15 = vmul.f32 %v916_v46, %v901_v26  ;;  %v920_v21 = vmul.f32 %v912_v57, %v900_v60  ;;  %v919_v63 = vmul.f32 %v908_v13, %v899_v8  ;;  %v918_v33 = vmul.f32 %v904_v16, %v898_v28  ;;  %v2267_v16 = vld [vmem:[%s3159_s5 + $0x8] sm:$0xff]  ;;  %v2269_v28 = vld [vmem:[%s3159_s5 + $0x18] sm:$0xff] }
 0x57b   :  { %v2277_v57 = vmov 5  }
 0x57c   :  { %v941_v32 = vadd.f32 %v936_v20, %v921_v15  ;;  %v940_v42 = vadd.f32 %v932_v34, %v920_v21  ;;  %v939_v35 = vadd.f32 %v928_v22, %v919_v63  ;;  %v938_v31 = vadd.f32 %v924_v27, %v918_v33  ;;  %v2773_v36 = vpop.permute.xlu0 %1021  ;;  %2162 = vset.pattern.permute.xlu1 %v2277_v57  ;;  %v2268_v20 = vld [vmem:[%s3159_s5] sm:$0xff]  ;;  %v2270_v22 = vld [vmem:[%s3159_s5 + $0x10] sm:$0xff] }
 0x57d   :  { %2161 = vset.pattern.permute.xlu0 %v2277_v57  ;;  %1777 = vperm.xlu1 %2162, %v2267_v16  }
 0x57e   :  { %2072 = vmatprep.subr.mxu1 %v941_v32  ;;  %1773 = vperm.xlu0 %2161, %v2268_v20  }
 0x57f   :  { %2073 = vmatpush3.msra.mxu1 %v941_v32 }
 0x580   :  { %2074 = vmatprep.subr.mxu1 %v940_v42  ;;  %v2775_v41 = vpop.permute.xlu0 %1016 }
 0x581   :  { %2075 = vmatpush3.msra.mxu1 %v940_v42  ;;  %1781 = vperm.xlu1 %2162, %v2270_v22  }
 0x582   :  { %2076 = vmatprep.subr.mxu1 %v939_v35  ;;  %1785 = vperm.xlu0 %2161, %v2269_v28  }
 0x583   :  { %2077 = vmatpush3.msra.mxu1 %v939_v35 }
 0x584   :  { %2078 = vmatprep.subr.mxu1 %v938_v31  ;;  %v1012_v45 = vpop.permute.xlu0 %1011 }
 0x585   :  { %2079 = vmatpush3.msra.mxu1 %v938_v31 }
 0x586   :  { %2081 = vmatmul.mubr.msk.f32.vlgmr.msra.gmra.mxu1 %vm146_vm0, %v943_v40 }
 0x587   :  { %2083 = vmatprep.mubr.msk.f32.mxu1 %vm146_vm0, %v944_v43 }
 0x588   :  { %v2777_v23 = vpop.permute.xlu0 %1006 }
 0x58a   :  { %2084 = vmatmul.mubr.msk.f32.gmra.mxu1 %vm146_vm0, %v945_v51 }
 0x58b   :  { %2086 = vmatprep.mubr.msk.f32.mxu1 %vm146_vm0, %v946_v54 }
 0x58c   :  { %v1002_v17 = vpop.permute.xlu0 %1001 }
 0x58e   :  { %2087 = vmatmul.mubr.msk.f32.gmra.mxu1 %vm146_vm0, %v947_v55 }
 0x58f   :  { %2089 = vmatprep.mubr.msk.f32.mxu1 %vm146_vm0, %v948_v7 }
 0x592   :  { %2090 = vmatmul.mubr.msk.f32.gmra.mxu1 %vm146_vm0, %v949_v56 }
 0x593   :  { %2092 = vmatprep.mubr.msk.f32.mxu1 %vm146_vm0, %v950_v61 }
 0x596   :  { %2093 = vmatmul.mubr.msk.f32.gmra.mxu1 %vm146_vm0, %v951_v59 }
 0x597   :  { %2095 = vmatprep.mubr.msk.f32.mxu1 %vm146_vm0, %v952_v62 }
 0x59a   :  { %2096 = vmatmul.mubr.msk.f32.gmra.mxu1 %vm146_vm0, %v953_v9 }
 0x59b   :  { %2098 = vmatprep.mubr.msk.f32.mxu1 %vm146_vm0, %v954_v12 }
 0x59e   :  { %2099 = vmatmul.mubr.msk.f32.gmra.mxu1 %vm146_vm0, %v955_v52 }
 0x59f   :  { %2101 = vmatprep.mubr.msk.f32.mxu1 %vm146_vm0, %v956_v25 }
 0x5a2   :  { %2102 = vmatmul.mubr.msk.f32.gmra.mxu1 %vm146_vm0, %v957_v48 }
 0x5b6   :  { %v997_v49 = vpop.permute.xlu0 %996 }
 0x5ba   :  { %v992_v3 = vpop.permute.xlu0 %991 }
 0x5be   :  { %v982_v50 = vpop.permute.xlu0 %981 }
 0x646   :  { %v2082_v2 = vpop.f32.mrf.mxu1 }
 0x647   :  { %v2782_v5 = vadd.f32 %v2082_v2, %v982_v50 }
 0x648   :  { %v1168_v46 = vpop.f32.mrf.mxu1 }
 0x649   :  { %3191 = vst [vmem:[#allocation6_spill] sm:$0xff] %v2782_v5  ;;  %v2785_v19 = vmul.f32 0.70710677, %v2782_v5  ;;  %v2787_v37 = vadd.f32 %v1168_v46, %v977_v4 }
 0x64a   :  { %v2085_v14 = vpop.f32.mrf.mxu1 }
 0x64b   :  { %3192 = vst [vmem:[#allocation7_spill] sm:$0xff] %v2785_v19  ;;  %3193 = vst [vmem:[#allocation8_spill] sm:$0xff] %v2787_v37  ;;  %v2790_v0 = vmul.f32 0.70710677, %v2787_v37  ;;  %v2792_v10 = vadd.f32 %v2085_v14, %v992_v3  ;;  %v1264_v29 = vand.u32 2147483647, %v2785_v19 }
 0x64c   :  { %v1178_v13 = vpop.f32.mrf.mxu1 }
 0x64d   :  { %3194 = vst [vmem:[#allocation9_spill] sm:$0xff] %v2790_v0  ;;  %3195 = vst [vmem:[#allocation10_spill] sm:$0xff] %v2792_v10  ;;  %v2802_v26 = vmul.f32 0.70710677, %v2792_v10  ;;  %v2804_v60 = vadd.f32 %v1178_v13, %v987_v1  ;;  %v1263_v15 = vand.u32 2147483647, %v2790_v0 }
 0x64e   :  { %v2088_v8 = vpop.f32.mrf.mxu1  ;;  %v1488_v34 = vsub.f32 0.0, %v1264_v29  ;;  %v1280_v35 = vmul.f32 0.3275911, %v1264_v29 }
 0x64f   :  { %3196 = vst [vmem:[#allocation11_spill] sm:$0xff] %v2804_v60  ;;  %v2814_v63 = vmul.f32 0.70710677, %v2804_v60  ;;  %v1266_v32 = vand.u32 2147483647, %v2802_v26  ;;  %v2817_v42 = vadd.f32 %v2088_v8, %v1002_v17  ;;  %v1487_v27 = vsub.f32 0.0, %v1263_v15 }
 0x650   :  { %v1188_v21 = vpop.f32.mrf.mxu1  ;;  %v1504_v40 = vmul.f32 %v1488_v34, %v1264_v29  ;;  %v1279_v51 = vmul.f32 0.3275911, %v1263_v15  ;;  %v1296_v61 = vadd.f32 1.0, %v1280_v35  ;;  %vm1586_vm13 = vcmp.ge.f32.partialorder %v2802_v26, 0.0  ;;  %v3227_v26 = vld [vmem:[#allocation6_spill] sm:$0xff] }
 0x651   :  { %3197 = vst [vmem:[#allocation12_spill] sm:$0xff] %v2814_v63  ;;  %3198 = vst [vmem:[#allocation13_spill] sm:$0xff] %v2817_v42  ;;  %v1265_v43 = vand.u32 2147483647, %v2814_v63  ;;  %v1490_v54 = vsub.f32 0.0, %v1266_v32  ;;  %v2820_v55 = vadd.f32 %v1188_v21, %v997_v49  ;;  %v1503_v59 = vmul.f32 %v1487_v27, %v1263_v15 }
 0x652   :  { %v2091_v33 = vpop.f32.mrf.mxu1  ;;  %v2823_v56 = vmul.f32 0.70710677, %v2817_v42  ;;  %v1521_v12 = vmul.f32 1.442695, %v1504_v40  ;;  %v1282_v52 = vmul.f32 0.3275911, %v1266_v32  ;;  %2203 = vrcp.f32 %v1296_v61 }
 0x653   :  { %3199 = vst [vmem:[#allocation14_spill] sm:$0xff] %v2820_v55  ;;  %v2825_v62 = vadd.f32 %v2091_v33, %v1012_v45  ;;  %v1489_v25 = vsub.f32 0.0, %v1265_v43  ;;  %v1295_v48 = vadd.f32 1.0, %v1279_v51  ;;  %v1506_v17 = vmul.f32 %v1490_v54, %v1266_v32 }
 0x654   :  { %v1198_v31 = vpop.f32.mrf.mxu1  ;;  %v2828_v3 = vmul.f32 0.70710677, %v2820_v55  ;;  %v1281_v1 = vmul.f32 0.3275911, %v1265_v43  ;;  %v1268_v50 = vand.u32 2147483647, %v2823_v56  ;;  %2205 = vpow2.f32 %v1521_v12 }
 0x655   :  { %v2831_v49 = vmul.f32 0.70710677, %v2825_v62  ;;  %v2835_v2 = vadd.f32 %v1198_v31, %v2777_v23  ;;  %v1519_v45 = vmul.f32 1.442695, %v1503_v59  ;;  %v1298_v46 = vadd.f32 1.0, %v1282_v52 }
 0x656   :  { %v2094_v7 = vpop.f32.mrf.mxu1  ;;  %3200 = vst [vmem:[#allocation15_spill] sm:$0xff] %v2828_v3  ;;  %v1505_v14 = vmul.f32 %v1489_v25, %v1265_v43  ;;  %2207 = vrcp.f32 %v1295_v48  ;;  %v1525_v13 = vmul.f32 1.442695, %v1506_v17  ;;  %v1267_v16 = vand.u32 2147483647, %v2828_v3 }
 0x657   :  { %3201 = vst [vmem:[#allocation16_spill] sm:$0xff] %v2835_v2  ;;  %v1270_v4 = vand.u32 2147483647, %v2831_v49  ;;  %v2839_v57 = vmul.f32 0.70710677, %v2835_v2  ;;  %v1297_v20 = vadd.f32 1.0, %v1281_v1  ;;  %v2846_v8 = vadd.f32 %v2094_v7, %v2773_v36 }
 0x658   :  { %v1208_v9 = vpop.f32.mrf.mxu1  ;;  %v1284_v29 = vmul.f32 0.3275911, %v1268_v50  ;;  %2209 = vpow2.f32 %v1519_v45  ;;  %v1523_v22 = vmul.f32 1.442695, %v1505_v14  ;;  %v1492_v34 = vsub.f32 0.0, %v1268_v50 }
 0x659   :  { %v2843_v23 = vand.u32 2147483647, %v2839_v57  ;;  %v1286_v15 = vmul.f32 0.3275911, %v1270_v4  ;;  %v2849_v21 = vadd.f32 %v1208_v9, %v2775_v41  ;;  %2211 = vrcp.f32 %v1298_v46 }
 0x65a   :  { %v2097_v18 = vpop.f32.mrf.mxu1  ;;  %v2852_v32 = vmul.f32 0.70710677, %v2846_v8  ;;  %2213 = vpow2.f32 %v1525_v13  ;;  %v1491_v33 = vsub.f32 0.0, %v1267_v16  ;;  %v1300_v36 = vadd.f32 1.0, %v1284_v29 }
 0x65b   :  { %v2855_v35 = vmul.f32 0.70710677, %v2849_v21  ;;  %2215 = vrcp.f32 %v1297_v20  ;;  %v1285_v27 = vmul.f32 0.3275911, %v2843_v23  ;;  %v1283_v41 = vmul.f32 0.3275911, %v1267_v16 }
 0x65c   :  { %v1218_v28 = vpop.f32.mrf.mxu1  ;;  %v1272_v31 = vand.u32 2147483647, %v2852_v32  ;;  %v1302_v40 = vadd.f32 1.0, %v1286_v15  ;;  %v2861_v51 = vadd.f32 %v2097_v18, %v2769_v38  ;;  %2217 = vpow2.f32 %v1523_v22 }
 0x65d   :  { %v1271_v43 = vand.u32 2147483647, %v2855_v35  ;;  %v1508_v7 = vmul.f32 %v1492_v34, %v1268_v50  ;;  %v1507_v59 = vmul.f32 %v1491_v33, %v1267_v16  ;;  %v1494_v9 = vsub.f32 0.0, %v1270_v4 }
 0x65e   :  { %v2100_v54 = vpop.f32.mrf.mxu1  ;;  %v1288_v61 = vmul.f32 0.3275911, %v1272_v31  ;;  %v2864_v52 = vmul.f32 0.70710677, %v2861_v51  ;;  %2219 = vrcp.f32 %v1300_v36  ;;  %v1301_v25 = vadd.f32 1.0, %v1285_v27 }
 0x65f   :  { %v1287_v12 = vmul.f32 0.3275911, %v1271_v43  ;;  %v2867_v17 = vadd.f32 %v1218_v28, %v2771_v30  ;;  %v1299_v1 = vadd.f32 1.0, %v1283_v41  ;;  %2221 = vrcp.f32 %v1302_v40  ;;  %v2870_v50 = vpop.eup %2203 }
 0x660   :  { %v1304_v48 = vadd.f32 1.0, %v1288_v61  ;;  %v1274_v45 = vand.u32 2147483647, %v2864_v52  ;;  %v1228_v18 = vpop.f32.mrf.mxu1  ;;  %v1529_v46 = vmul.f32 1.442695, %v1508_v7  ;;  %v1510_v20 = vmul.f32 %v1494_v9, %v1270_v4 }
 0x661   :  { %v1303_v38 = vadd.f32 1.0, %v1287_v12  ;;  %v2873_v14 = vmul.f32 0.70710677, %v2867_v17  ;;  %v2875_v13 = vpop.eup %2205  ;;  %v1527_v16 = vmul.f32 1.442695, %v1507_v59  ;;  %v1496_v15 = vsub.f32 0.0, %v1272_v31 }
 0x662   :  { %2223 = vrcp.f32 %v1304_v48  ;;  %3202 = vst [vmem:[#allocation17_spill] sm:$0xff] %v2875_v13  ;;  %v1290_v30 = vmul.f32 0.3275911, %v1274_v45  ;;  %v2881_v22 = vadd.f32 %v2100_v54, %v2765_v47  ;;  %v1495_v34 = vsub.f32 0.0, %v1271_v43  ;;  %v2103_v27 = vpop.f32.mrf.mxu1 }
 0x663   :  { %2225 = vrcp.f32 %v1303_v38  ;;  %v2877_v29 = vpop.eup %2207  ;;  %v1273_v28 = vand.u32 2147483647, %v2873_v14  ;;  %v2884_v36 = vadd.f32 %v1228_v18, %v2767_v39  ;;  %v1493_v4 = vsub.f32 0.0, %v2843_v23 }
 0x664   :  { %2227 = vrcp.f32 %v1301_v25  ;;  %v1306_v33 = vadd.f32 1.0, %v1290_v30  ;;  %v2890_v7 = vmul.f32 0.70710677, %v2881_v22  ;;  %v1533_v47 = vmul.f32 1.442695, %v1510_v20 }
 0x665   :  { %2229 = vrcp.f32 %v1299_v1  ;;  %v2886_v41 = vpop.eup %2209  ;;  %v1289_v40 = vmul.f32 0.3275911, %v1273_v28  ;;  %v2895_v54 = vmul.f32 0.5, %v2825_v62  ;;  %v2898_v39 = vmul.f32 0.70710677, %v2884_v36 }
 0x666   :  { %3203 = vst [vmem:[#allocation18_spill] sm:$0xff] %v2886_v41  ;;  %2231 = vpow2.f32 %v1529_v46  ;;  %v2892_v61 = vpop.eup %2211  ;;  %v1512_v9 = vmul.f32 %v1496_v15, %v1272_v31  ;;  %v1276_v25 = vand.u32 2147483647, %v2890_v7  ;;  %v1511_v1 = vmul.f32 %v1495_v34, %v1271_v43  ;;  %v1238_v46 = vpop.f32.mrf.mxu1 }
 0x667   :  { %3204 = vst [vmem:[#allocation19_spill] sm:$0xff] %v2895_v54  ;;  %2233 = vrcp.f32 %v1306_v33  ;;  %v2900_v59 = vpop.eup %2213  ;;  %v1305_v12 = vadd.f32 1.0, %v1289_v40  ;;  %v1498_v38 = vsub.f32 0.0, %v1274_v45  ;;  %v1275_v18 = vand.u32 2147483647, %v2898_v39 }
 0x668   :  { %3205 = vst [vmem:[#allocation20_spill] sm:$0xff] %v2900_v59  ;;  %2235 = vpow2.f32 %v1527_v16  ;;  %v2903_v48 = vpop.eup %2215  ;;  %v2907_v62 = vadd.f32 %v2103_v27, %v2761_v11  ;;  %v1509_v20 = vmul.f32 %v1493_v4, %v2843_v23  ;;  %v2911_v30 = vmul.f32 0.5, %v2846_v8 }
 0x669   :  { %2237 = vrcp.f32 %v1305_v12  ;;  %v1292_v31 = vmul.f32 0.3275911, %v1276_v25  ;;  %v2913_v16 = vpop.eup %2217  ;;  %v2916_v15 = vmul.f32 0.5, %v2849_v21  ;;  %v1291_v43 = vmul.f32 0.3275911, %v1275_v18 }
 0x66a   :  { %3206 = vst [vmem:[#allocation21_spill] sm:$0xff] %v2911_v30  ;;  %3207 = vst [vmem:[#allocation22_spill] sm:$0xff] %v2913_v16  ;;  %2239 = vpow2.f32 %v1533_v47  ;;  %v2919_v34 = vmul.f32 0.70710677, %v2907_v62  ;;  %v1537_v11 = vmul.f32 1.442695, %v1512_v9  ;;  %v2922_v23 = vadd.f32 %v1238_v46, %v2763_v24 }
 0x66b   :  { %3208 = vst [vmem:[#allocation23_spill] sm:$0xff] %v2916_v15  ;;  %v1497_v33 = vsub.f32 0.0, %v1273_v28  ;;  %v1308_v27 = vadd.f32 1.0, %v1292_v31  ;;  %v2924_v8 = vpop.eup %2219  ;;  %v1535_v4 = vmul.f32 1.442695, %v1511_v1  ;;  %v1514_v40 = vmul.f32 %v1498_v38, %v1274_v45 }
 0x66c   :  { %v1307_v12 = vadd.f32 1.0, %v1291_v43  ;;  %v1278_v47 = vand.u32 2147483647, %v2919_v34  ;;  %v2927_v6 = vpop.eup %2221  ;;  %v2929_v21 = vmul.f32 1.442695, %v1509_v20  ;;  %v2932_v58 = vmul.f32 0.5, %v2861_v51 }
 0x66d   :  { %2241 = vrcp.f32 %v1308_v27  ;;  %v2935_v9 = vmul.f32 0.70710677, %v2922_v23  ;;  %v2940_v46 = vmul.f32 0.5, %v2867_v17  ;;  %v1500_v45 = vsub.f32 0.0, %v1276_v25 }
 0x66e   :  { %2243 = vrcp.f32 %v1307_v12  ;;  %v1294_v1 = vmul.f32 0.3275911, %v1278_v47  ;;  %v1513_v20 = vmul.f32 %v1497_v33, %v1273_v28  ;;  %v1541_v27 = vmul.f32 1.442695, %v1514_v40 }
 0x66f   :  { %v2937_v24 = vpop.eup %2223  ;;  %2245 = vpow2.f32 %v1537_v11  ;;  %v1277_v31 = vand.u32 2147483647, %v2935_v9  ;;  %v2952_v12 = vmul.f32 0.5, %v2881_v22  ;;  %v1499_v37 = vsub.f32 0.0, %v1275_v18 }
 0x670   :  { %v2942_v38 = vpop.eup %2225  ;;  %v1352_v51 = vmul.f32 1.0614054, %v2937_v24  ;;  %2247 = vpow2.f32 %v1535_v4  ;;  %v1310_v44 = vadd.f32 1.0, %v1294_v1  ;;  %v1516_v33 = vmul.f32 %v1500_v45, %v1276_v25 }
 0x671   :  { %v2946_v43 = vpop.eup %2227  ;;  %v1351_v53 = vmul.f32 1.0614054, %v2942_v38  ;;  %v1293_v5 = vmul.f32 0.3275911, %v1277_v31  ;;  %v1350_v60 = vmul.f32 1.0614054, %v2927_v6 }
 0x672   :  { %v2949_v17 = vpop.eup %2229  ;;  %v1851_v11 = vadd.f32 -1.4531521, %v1352_v51  ;;  %2249 = vrcp.f32 %v1310_v44  ;;  %v1539_v40 = vmul.f32 1.442695, %v1513_v20  ;;  %v1349_v41 = vmul.f32 1.0614054, %v2946_v43 }
 0x673   :  { %v2954_v28 = vpop.eup %2231  ;;  %v1850_v0 = vadd.f32 -1.4531521, %v1351_v53  ;;  %v1309_v1 = vadd.f32 1.0, %v1293_v5  ;;  %v1502_v55 = vsub.f32 0.0, %v1278_v47  ;;  %v1849_v25 = vadd.f32 -1.4531521, %v1350_v60 }
 0x674   :  { %v2957_v4 = vpop.eup %2233  ;;  %v1384_v10 = vmul.f32 %v2937_v24, %v1851_v11  ;;  %v1515_v44 = vmul.f32 %v1499_v37, %v1275_v18  ;;  %v1501_v53 = vsub.f32 0.0, %v1277_v31  ;;  %v1545_v20 = vmul.f32 1.442695, %v1516_v33 }
 0x675   :  { %v2961_v22 = vpop.eup %2235  ;;  %v1354_v51 = vmul.f32 1.0614054, %v2957_v4  ;;  %v1383_v63 = vmul.f32 %v2942_v38, %v1850_v0  ;;  %2251 = vrcp.f32 %v1309_v1  ;;  %v1382_v11 = vmul.f32 %v2927_v6, %v1849_v25 }
 0x676   :  { %3209 = vst [vmem:[#allocation24_spill] sm:$0xff] %v2961_v22  ;;  %v1400_v45 = vadd.f32 1.4214138, %v1384_v10  ;;  %v2965_v42 = vpop.eup %2237  ;;  %2253 = vpow2.f32 %v1541_v27  ;;  %v1848_v0 = vadd.f32 -1.4531521, %v1349_v41  ;;  %v1518_v37 = vmul.f32 %v1502_v55, %v1278_v47 }
 0x677   :  { %v1853_v5 = vadd.f32 -1.4531521, %v1354_v51  ;;  %v1399_v13 = vadd.f32 1.4214138, %v1383_v63  ;;  %v2968_v3 = vpop.eup %2239  ;;  %v1353_v54 = vmul.f32 1.0614054, %v2965_v42  ;;  %2255 = vpow2.f32 %v1539_v40 }
 0x678   :  { %v1416_v16 = vmul.f32 %v2937_v24, %v1400_v45  ;;  %v1517_v18 = vmul.f32 %v1501_v53, %v1277_v31  ;;  %v1398_v63 = vadd.f32 1.4214138, %v1382_v11  ;;  %2257 = vpow2.f32 %v1545_v20 }
 0x679   :  { %v1386_v60 = vmul.f32 %v2957_v4, %v1853_v5  ;;  %v1415_v10 = vmul.f32 %v2942_v38, %v1399_v13  ;;  %v1852_v33 = vadd.f32 -1.4531521, %v1353_v54  ;;  %v1543_v25 = vmul.f32 1.442695, %v1515_v44 }
 0x67a   :  { %v1867_v1 = vadd.f32 -0.28449672, %v1416_v16  ;;  %v2974_v51 = vpop.eup %2241  ;;  %v1381_v13 = vmul.f32 %v2946_v43, %v1848_v0  ;;  %v1549_v54 = vmul.f32 1.442695, %v1518_v37  ;;  %v1547_v45 = vmul.f32 1.442695, %v1517_v18 }
 0x67b   :  { %v1402_v27 = vadd.f32 1.4214138, %v1386_v60  ;;  %v1866_v59 = vadd.f32 -0.28449672, %v1415_v10  ;;  %v2976_v2 = vpop.eup %2243  ;;  %v1356_v41 = vmul.f32 1.0614054, %v2974_v51  ;;  %v1385_v55 = vmul.f32 %v2965_v42, %v1852_v33 }
 0x67c   :  { %v1448_v47 = vmul.f32 %v2937_v24, %v1867_v1  ;;  %v2246_v31 = vpop.eup %2245  ;;  %v1355_v16 = vmul.f32 1.0614054, %v2976_v2  ;;  %v1414_v11 = vmul.f32 %v2927_v6, %v1398_v63  ;;  %2259 = vpow2.f32 %v1543_v25 }
 0x67d   :  { %v1418_v40 = vmul.f32 %v2957_v4, %v1402_v27  ;;  %v1447_v44 = vmul.f32 %v2942_v38, %v1866_v59  ;;  %v2248_v53 = vpop.eup %2247  ;;  %v1855_v20 = vadd.f32 -1.4531521, %v1356_v41  ;;  %v1401_v5 = vadd.f32 1.4214138, %v1385_v55 }
 0x67e   :  { %v1854_v60 = vadd.f32 -1.4531521, %v1355_v16  ;;  %v1348_v33 = vmul.f32 1.0614054, %v2924_v8  ;;  %v1464_v27 = vadd.f32 0.2548296, %v1448_v47  ;;  %2261 = vpow2.f32 %v2929_v21 }
 0x67f   :  { %v1869_v10 = vadd.f32 -0.28449672, %v1418_v40  ;;  %v2987_v0 = vpop.eup %2249  ;;  %v1388_v37 = vmul.f32 %v2974_v51, %v1855_v20  ;;  %v1417_v1 = vmul.f32 %v2965_v42, %v1401_v5  ;;  %v1397_v15 = vadd.f32 1.4214138, %v1381_v13 }
 0x680   :  { %v1358_v59 = vmul.f32 1.0614054, %v2987_v0  ;;  %v1387_v18 = vmul.f32 %v2976_v2, %v1854_v60  ;;  %v1463_v63 = vadd.f32 0.2548296, %v1447_v44  ;;  %v1865_v16 = vadd.f32 -0.28449672, %v1414_v11 }
 0x681   :  { %v1450_v41 = vmul.f32 %v2957_v4, %v1869_v10  ;;  %v1404_v25 = vadd.f32 1.4214138, %v1388_v37  ;;  %v1868_v55 = vadd.f32 -0.28449672, %v1417_v1  ;;  %2263 = vpow2.f32 %v1549_v54 }
 0x682   :  { %v2995_v40 = vpop.eup %2251  ;;  %v1857_v20 = vadd.f32 -1.4531521, %v1358_v59  ;;  %v1403_v19 = vadd.f32 1.4214138, %v1387_v18  ;;  %v1480_v10 = vmul.f32 %v2937_v24, %v1464_v27  ;;  %v1479_v54 = vmul.f32 %v2942_v38, %v1463_v63 }
 0x683   :  { %v1466_v5 = vadd.f32 0.2548296, %v1450_v41  ;;  %v1357_v47 = vmul.f32 1.0614054, %v2995_v40  ;;  %v1420_v13 = vmul.f32 %v2974_v51, %v1404_v25  ;;  %v1449_v60 = vmul.f32 %v2965_v42, %v1868_v55  ;;  %v2254_v44 = vpop.eup %2253 }
 0x684   :  { %v1390_v21 = vmul.f32 %v2987_v0, %v1857_v20  ;;  %v1419_v37 = vmul.f32 %v2976_v2, %v1403_v19  ;;  %v2256_v1 = vpop.eup %2255  ;;  %2265 = vpow2.f32 %v1547_v45  ;;  %v1446_v55 = vmul.f32 %v2927_v6, %v1865_v16 }
 0x685   :  { %v1482_v11 = vmul.f32 %v2957_v4, %v1466_v5  ;;  %v1856_v59 = vadd.f32 -1.4531521, %v1357_v47  ;;  %v1871_v18 = vadd.f32 -0.28449672, %v1420_v13  ;;  %v1465_v41 = vadd.f32 0.2548296, %v1449_v60  ;;  %v2258_v24 = vpop.eup %2257 }
 0x686   :  { %v1406_v22 = vadd.f32 1.4214138, %v1390_v21  ;;  %v1870_v25 = vadd.f32 -0.28449672, %v1419_v37  ;;  %v1847_v4 = vadd.f32 -1.4531521, %v1348_v33  ;;  %v1560_v63 = vmul.f32 %v2246_v31, %v1480_v10 }
 0x687   :  { %v1562_v30 = vmul.f32 %v2254_v44, %v1482_v11  ;;  %v1389_v27 = vmul.f32 %v2995_v40, %v1856_v59  ;;  %v1452_v20 = vmul.f32 %v2974_v51, %v1871_v18  ;;  %v1481_v19 = vmul.f32 %v2965_v42, %v1465_v41 }
 0x688   :  { %vm1594_vm2 = vcmp.ge.f32.partialorder %v2864_v52, 0.0  ;;  %v1422_v38 = vmul.f32 %v2987_v0, %v1406_v22  ;;  %v1451_v45 = vmul.f32 %v2976_v2, %v1870_v25  ;;  %v1559_v5 = vmul.f32 %v2248_v53, %v1479_v54 }
 0x689   :  { %v1405_v47 = vadd.f32 1.4214138, %v1389_v27  ;;  %v1468_v13 = vadd.f32 0.2548296, %v1452_v20  ;;  %v1578_v60 = vsub.f32 1.0, %v1562_v30  ;;  %v1413_v16 = vmul.f32 %v2946_v43, %v1397_v15  ;;  %v2260_v59 = vpop.eup %2259 }
 0x68a   :  { %v1873_v44 = vadd.f32 -0.28449672, %v1422_v38  ;;  %v1467_v21 = vadd.f32 0.2548296, %v1451_v45  ;;  %v1561_v37 = vmul.f32 %v2256_v1, %v1481_v19  ;;  %v1462_v11 = vadd.f32 0.2548296, %v1446_v55 }
 0x68b   :  { %vm1592_vm3 = vcmp.ge.f32.partialorder %v2852_v32, 0.0  ;;  %v3015_v42 = vmul.f32 0.5, %v2884_v36  ;;  %v1421_v22 = vmul.f32 %v2995_v40, %v1405_v47  ;;  %v1484_v31 = vmul.f32 %v2974_v51, %v1468_v13  ;;  %v2262_v41 = vpop.eup %2261 }
 0x68c   :  { %v1380_v53 = vmul.f32 %v2924_v8, %v1847_v4  ;;  %vm1591_vm4 = vcmp.ge.f32.partialorder %v2855_v35, 0.0  ;;  %v1454_v30 = vmul.f32 %v2987_v0, %v1873_v44  ;;  %v1483_v15 = vmul.f32 %v2976_v2, %v1467_v21 }
 0x68d   :  { %v1576_v33 = vsub.f32 1.0, %v1560_v63  ;;  %v1575_v10 = vsub.f32 1.0, %v1559_v5  ;;  %vm1593_vm5 = vcmp.ge.f32.partialorder %v2873_v14, 0.0  ;;  %v1872_v54 = vadd.f32 -0.28449672, %v1421_v22 }
 0x68e   :  { %v1564_v1 = vmul.f32 %v2258_v24, %v1484_v31  ;;  %v1610_v36 = vsub.f32 0.0, %v1578_v60  ;;  %v1864_v18 = vadd.f32 -0.28449672, %v1413_v16  ;;  %vm1596_vm6 = vcmp.ge.f32.partialorder %v2890_v7, 0.0  ;;  %v2264_v20 = vpop.eup %2263 }
 0x68f   :  { %vm1595_vm7 = vcmp.ge.f32.partialorder %v2898_v39, 0.0  ;;  %v1470_v51 = vadd.f32 0.2548296, %v1454_v30  ;;  %v1563_v25 = vmul.f32 %v2260_v59, %v1483_v15  ;;  %v1577_v55 = vsub.f32 1.0, %v1561_v37 }
 0x690   :  { %v1478_v27 = vmul.f32 %v2927_v6, %v1462_v11  ;;  %vm1598_vm8 = vcmp.ge.f32.partialorder %v2919_v34, 0.0  ;;  %v1646_v2 = vmul.f32 0.5, %v2907_v62  ;;  %v1453_v19 = vmul.f32 %v2995_v40, %v1872_v54 }
 0x691   :  { %v1580_v24 = vsub.f32 1.0, %v1564_v1  ;;  %v1486_v4 = vmul.f32 %v2987_v0, %v1470_v51  ;;  %v1579_v38 = vsub.f32 1.0, %v1563_v25  ;;  %v1608_v45 = vsub.f32 0.0, %v1576_v33  ;;  %v2266_v16 = vpop.eup %2265 }
 0x692   :  { %v1607_v63 = vsub.f32 0.0, %v1575_v10  ;;  %v1469_v5 = vadd.f32 0.2548296, %v1453_v19  ;;  %v1626_v47 = vsel %vm1594_vm2, %v1578_v60, %v1610_v36  ;;  %v1445_v13 = vmul.f32 %v2946_v43, %v1864_v18 }
 0x693   :  { %v1396_v6 = vadd.f32 1.4214138, %v1380_v53  ;;  %v1566_v44 = vmul.f32 %v2264_v20, %v1486_v4  ;;  %v1612_v21 = vsub.f32 0.0, %v1580_v24  ;;  %v1609_v37 = vsub.f32 0.0, %v1577_v55 }
 0x694   :  { %v3035_v62 = vmul.f32 %v2968_v3, %v1478_v27  ;;  %v1485_v11 = vmul.f32 %v2995_v40, %v1469_v5  ;;  %v1611_v0 = vsub.f32 0.0, %v1579_v38  ;;  %v1461_v59 = vadd.f32 0.2548296, %v1445_v13 }
 0x695   :  { %v1412_v22 = vmul.f32 %v2924_v8, %v1396_v6  ;;  %vm1597_vm9 = vcmp.ge.f32.partialorder %v2935_v9, 0.0  ;;  %v1645_v52 = vmul.f32 0.5, %v2922_v23  ;;  %v1582_v60 = vsub.f32 1.0, %v1566_v44 }
 0x696   :  { %v3043_v31 = vsel %vm1592_vm3, %v1576_v33, %v1608_v45  ;;  %v1565_v53 = vmul.f32 %v2266_v16, %v1485_v11  ;;  %v3045_v30 = vadd.f32 1.0, %v1626_v47  ;;  %v3049_v3 = vsel %vm1591_vm4, %v1575_v10, %v1607_v63 }
 0x697   :  { %v1477_v40 = vmul.f32 %v2946_v43, %v1461_v59  ;;  %v1614_v15 = vsub.f32 0.0, %v1582_v60  ;;  %v1625_v54 = vsel %vm1593_vm5, %v1577_v55, %v1609_v37  ;;  %v1863_v1 = vadd.f32 -0.28449672, %v1412_v22 }
 0x698   :  { %v1347_v23 = vmul.f32 1.0614054, %v2949_v17  ;;  %v1581_v36 = vsub.f32 1.0, %v1565_v53  ;;  %v1628_v32 = vsel %vm1596_vm6, %v1580_v24, %v1612_v21  ;;  %v1627_v33 = vsel %vm1595_vm7, %v1579_v38, %v1611_v0 }
 0x699   :  { %v1574_v35 = vsub.f32 1.0, %v3035_v62  ;;  %v1630_v10 = vsel %vm1598_vm8, %v1582_v60, %v1614_v15  ;;  %v1444_v43 = vmul.f32 %v2924_v8, %v1863_v1  ;;  %v1346_v14 = vmul.f32 1.0614054, %v2892_v61 }
 0x69a   :  { %v1846_v18 = vadd.f32 -1.4531521, %v1347_v23  ;;  %v1662_v51 = vadd.f32 1.0, %v1630_v10  ;;  %v1613_v25 = vsub.f32 0.0, %v1581_v36  ;;  %v3064_v55 = vmul.f32 %v2262_v41, %v1477_v40 }
 0x69b   :  { %v1345_v7 = vmul.f32 1.0614054, %v2903_v48  ;;  %v1460_v27 = vadd.f32 0.2548296, %v1444_v43  ;;  %v1845_v20 = vadd.f32 -1.4531521, %v1346_v14  ;;  %v1674_v43 = vmul.f32 %v3045_v30, %v2932_v58 }
 0x69c   :  { %v1379_v39 = vmul.f32 %v2949_v17, %v1846_v18  ;;  %v1344_v19 = vmul.f32 1.0614054, %v2870_v50  ;;  %vm1590_vm10 = vcmp.ge.f32.partialorder %v2831_v49, 0.0  ;;  %v1678_v34 = vmul.f32 %v1662_v51, %v1646_v2 }
 0x69d   :  { %v1629_v24 = vsel %vm1597_vm9, %v1581_v36, %v1613_v25  ;;  %v1660_v4 = vadd.f32 1.0, %v1628_v32  ;;  %v1844_v38 = vadd.f32 -1.4531521, %v1345_v7  ;;  %v1476_v41 = vmul.f32 %v2924_v8, %v1460_v27 }
 0x69e   :  { %v1661_v45 = vadd.f32 1.0, %v1629_v24  ;;  %v1395_v63 = vadd.f32 1.4214138, %v1379_v39  ;;  %v1378_v5 = vmul.f32 %v2892_v61, %v1845_v20  ;;  %2104 = vmatprep.subr.mxu0 %v1678_v34  ;;  %v1659_v47 = vadd.f32 1.0, %v1627_v33  ;;  %v3210_v20 = vld [vmem:[#allocation21_spill] sm:$0xff] }
 0x69f   :  { %v1377_v13 = vmul.f32 %v2903_v48, %v1844_v38  ;;  %v1843_v6 = vadd.f32 -1.4531521, %v1344_v19  ;;  %v1343_v16 = vmul.f32 1.0614054, %v2877_v29  ;;  %vm1589_vm11 = vcmp.ge.f32.partialorder %v2839_v57, 0.0  ;;  %2105 = vmatpush3.msra.mxu0 %v1678_v34  ;;  %v3211_v34 = vld [vmem:[#allocation24_spill] sm:$0xff] }
 0x6a0   :  { %v1677_v9 = vmul.f32 %v1661_v45, %v1645_v52  ;;  %v1573_v2 = vsub.f32 1.0, %v3064_v55  ;;  %v1556_v44 = vmul.f32 %v2954_v28, %v1476_v41  ;;  %v1411_v8 = vmul.f32 %v2949_v17, %v1395_v63  ;;  %v3212_v45 = vld [vmem:[#allocation7_spill] sm:$0xff] }
 0x6a1   :  { %v1394_v21 = vadd.f32 1.4214138, %v1378_v5  ;;  %v1393_v37 = vadd.f32 1.4214138, %v1377_v13  ;;  %v1376_v62 = vmul.f32 %v2870_v50, %v1843_v6  ;;  %v1842_v11 = vadd.f32 -1.4531521, %v1343_v16 }
 0x6a2   :  { %vm1588_vm12 = vcmp.ge.f32.partialorder %v2823_v56, 0.0  ;;  %2106 = vmatprep.subr.mxu0 %v1677_v9  ;;  %v1676_v0 = vmul.f32 %v1660_v4, %v2952_v12  ;;  %v1606_v59 = vsub.f32 0.0, %v1574_v35  ;;  %v1572_v22 = vsub.f32 1.0, %v1556_v44  ;;  %v3213_v41 = vld [vmem:[#allocation23_spill] sm:$0xff]  ;;  %v3214_v6 = vld [vmem:[#allocation16_spill] sm:$0xff] }
 0x6a3   :  { %v1862_v60 = vadd.f32 -0.28449672, %v1411_v8  ;;  %2107 = vmatpush3.msra.mxu0 %v1677_v9  ;;  %v1410_v52 = vmul.f32 %v2892_v61, %v1394_v21  ;;  %v1409_v28 = vmul.f32 %v2903_v48, %v1393_v37  ;;  %v1392_v53 = vadd.f32 1.4214138, %v1376_v62  ;;  %v3215_v9 = vld [vmem:[#allocation20_spill] sm:$0xff] }
 0x6a4   :  { %v1375_v40 = vmul.f32 %v2877_v29, %v1842_v11  ;;  %2108 = vmatprep.subr.mxu0 %v1676_v0  ;;  %v1675_v15 = vmul.f32 %v1659_v47, %v3015_v42  ;;  %v1657_v1 = vadd.f32 1.0, %v1625_v54  ;;  %v1605_v23 = vsub.f32 0.0, %v1573_v2  ;;  %v3218_v11 = vld [vmem:[#allocation15_spill] sm:$0xff] }
 0x6a5   :  { %v1443_v36 = vmul.f32 %v2949_v17, %v1862_v60  ;;  %2109 = vmatpush3.msra.mxu0 %v1676_v0  ;;  %v1861_v12 = vadd.f32 -0.28449672, %v1410_v52  ;;  %v1860_v32 = vadd.f32 -0.28449672, %v1409_v28  ;;  %v1408_v33 = vmul.f32 %v2870_v50, %v1392_v53  ;;  %v3220_v52 = vld [vmem:[#allocation13_spill] sm:$0xff] }
 0x6a6   :  { %v1391_v10 = vadd.f32 1.4214138, %v1375_v40  ;;  %2110 = vmatprep.subr.mxu0 %v1675_v15  ;;  %v1656_v18 = vadd.f32 1.0, %v3043_v31  ;;  %v1622_v14 = vsel %vm1590_vm10, %v1574_v35, %v1606_v59  ;;  %v1604_v54 = vsub.f32 0.0, %v1572_v22 }
 0x6a7   :  { %v1459_v42 = vadd.f32 0.2548296, %v1443_v36  ;;  %2111 = vmatpush3.msra.mxu0 %v1675_v15  ;;  %v1442_v51 = vmul.f32 %v2892_v61, %v1861_v12  ;;  %v1441_v25 = vmul.f32 %v2903_v48, %v1860_v32  ;;  %v1859_v55 = vadd.f32 -0.28449672, %v1408_v33  ;;  %v3221_v12 = vld [vmem:[#allocation12_spill] sm:$0xff]  ;;  %v3222_v32 = vld [vmem:[#allocation14_spill] sm:$0xff] }
 0x6a8   :  { %2112 = vmatprep.subr.mxu0 %v1674_v43  ;;  %v1673_v7 = vmul.f32 %v1657_v1, %v2940_v46  ;;  %v1655_v27 = vadd.f32 1.0, %v3049_v3  ;;  %v1407_v31 = vmul.f32 %v2877_v29, %v1391_v10  ;;  %v1621_v49 = vsel %vm1589_vm11, %v1573_v2, %v1605_v23  ;;  %v3216_v2 = vld [vmem:[#allocation22_spill] sm:$0xff] }
 0x6a9   :  { %v1475_v58 = vmul.f32 %v2949_v17, %v1459_v42  ;;  %2113 = vmatpush3.msra.mxu0 %v1674_v43  ;;  %v1458_v30 = vadd.f32 0.2548296, %v1442_v51  ;;  %v1457_v35 = vadd.f32 0.2548296, %v1441_v25  ;;  %v1440_v39 = vmul.f32 %v2870_v50, %v1859_v55  ;;  %v3223_v43 = vld [vmem:[#allocation18_spill] sm:$0xff] }
 0x6aa   :  { %2114 = vmatprep.subr.mxu0 %v1673_v7  ;;  %v1672_v19 = vmul.f32 %v1656_v18, %v3210_v20  ;;  %v1654_v46 = vadd.f32 1.0, %v1622_v14  ;;  %v1858_v24 = vadd.f32 -0.28449672, %v1407_v31  ;;  %v1620_v17 = vsel %vm1588_vm12, %v1572_v22, %v1604_v54  ;;  %v3219_v22 = vld [vmem:[#allocation17_spill] sm:$0xff]  ;;  %v3224_v14 = vld [vmem:[#allocation10_spill] sm:$0xff]  ;;  %v3225_v31 = vld [vmem:[#allocation11_spill] sm:$0xff] }
 0x6ab   :  { %v1555_v3 = vmul.f32 %v3211_v34, %v1475_v58  ;;  %2115 = vmatpush3.msra.mxu0 %v1673_v7  ;;  %v1474_v57 = vmul.f32 %v2892_v61, %v1458_v30  ;;  %v1473_v4 = vmul.f32 %v2903_v48, %v1457_v35  ;;  %v1456_v38 = vadd.f32 0.2548296, %v1440_v39  ;;  %v3217_v48 = vld [vmem:[#allocation19_spill] sm:$0xff]  ;;  %v3226_v20 = vld [vmem:[#allocation9_spill] sm:$0xff] }
 0x6ac   :  { %vm1584_vm14 = vcmp.ge.f32.partialorder %v3212_v45, 0.0  ;;  %2116 = vmatprep.subr.mxu0 %v1672_v19  ;;  %v1671_v63 = vmul.f32 %v1655_v27, %v3213_v41  ;;  %v1653_v5 = vadd.f32 1.0, %v1621_v49  ;;  %v1439_v13 = vmul.f32 %v2877_v29, %v1858_v24  ;;  %v3228_v24 = vld [vmem:[#allocation8_spill] sm:$0xff]  ;;  %v1682_v41 = vld [vmem:[%s3166_s4 + $0x18] sm:$0xff] }
 0x6ad   :  { %v1571_v47 = vsub.f32 1.0, %v1555_v3  ;;  %v1637_v16 = vmul.f32 0.5, %v3214_v6  ;;  %2117 = vmatpush3.msra.mxu0 %v1672_v19  ;;  %v1554_v56 = vmul.f32 %v3215_v9, %v1474_v57  ;;  %v1553_v44 = vmul.f32 %v3216_v2, %v1473_v4  ;;  %v1681_v45 = vld [vmem:[%s3166_s4 + $0x10] sm:$0xff]  ;;  %v1778_v6 = vpop.permute.xlu1 %1777 }
 0x6ae   :  { %v1472_v61 = vmul.f32 %v2870_v50, %v1456_v38  ;;  %2118 = vmatprep.subr.mxu0 %v1671_v63  ;;  %v1670_v8 = vmul.f32 %v1654_v46, %v3217_v48  ;;  %v1652_v21 = vadd.f32 1.0, %v1620_v17  ;;  %v1455_v62 = vadd.f32 0.2548296, %v1439_v13  ;;  %v1680_v38 = vld [vmem:[%s3166_s4 + $0x8] sm:$0xff]  ;;  %v3231_v48 = vld [vmem:[#allocation5_spill] sm:$0xff] }
 0x6af   :  { %v1603_v37 = vsub.f32 0.0, %v1571_v47  ;;  %vm1587_vm15 = vcmp.ge.f32.partialorder %v3218_v11, 0.0  ;;  %2119 = vmatpush3.msra.mxu0 %v1671_v63  ;;  %v1570_v0 = vsub.f32 1.0, %v1554_v56  ;;  %v1569_v59 = vsub.f32 1.0, %v1553_v44  ;;  %v3230_v56 = vld [vmem:[#allocation2_spill] sm:$0xff]  ;;  %v3232_v11 = vld [vmem:[#allocation4_spill] sm:$0xff] }
 0x6b0   :  { %v1552_v60 = vmul.f32 %v3219_v22, %v1472_v61  ;;  %v1636_v28 = vmul.f32 0.5, %v3220_v52  ;;  %2120 = vmatprep.subr.mxu0 %v1670_v8  ;;  %v1669_v53 = vmul.f32 %v1653_v5, %v1637_v16  ;;  %v1471_v50 = vmul.f32 %v2877_v29, %v1455_v62  ;;  %v1774_v5 = vpop.permute.xlu0 %1773 }
 0x6b1   :  { %v1619_v40 = vsel %vm1587_vm15, %v1571_v47, %v1603_v37  ;;  %2121 = vmatpush3.msra.mxu0 %v1670_v8  ;;  %v1602_v1 = vsub.f32 0.0, %v1570_v0  ;;  %v1601_v23 = vsub.f32 0.0, %v1569_v59  ;;  %vm1585_vm0 = vcmp.ge.f32.partialorder %v3221_v12, 0.0  ;;  %v3229_v47 = vld [vmem:[#allocation3_spill] sm:$0xff] }
 0x6b2   :  { %v1651_v15 = vadd.f32 1.0, %v1619_v40  ;;  %v1568_v36 = vsub.f32 1.0, %v1552_v60  ;;  %v1635_v33 = vmul.f32 0.5, %v3222_v32  ;;  %2122 = vmatprep.subr.mxu0 %v1669_v53  ;;  %v1668_v10 = vmul.f32 %v1652_v21, %v1636_v28 }
 0x6b3   :  { %v1551_v18 = vmul.f32 %v3223_v43, %v1471_v50  ;;  %v1634_v42 = vmul.f32 0.5, %v3224_v14  ;;  %2123 = vmatpush3.msra.mxu0 %v1669_v53  ;;  %v1618_v54 = vsel %vm1586_vm13, %v1570_v0, %v1602_v1  ;;  %v1617_v29 = vsel %vm1585_vm0, %v1569_v59, %v1601_v23  ;;  %v1782_v59 = vpop.permute.xlu1 %1781 }
 0x6b4   :  { %v1600_v51 = vsub.f32 0.0, %v1568_v36  ;;  %2124 = vmatprep.subr.mxu0 %v1668_v10  ;;  %v1667_v25 = vmul.f32 %v1651_v15, %v1635_v33  ;;  %v1650_v55 = vadd.f32 1.0, %v1618_v54  ;;  %v1649_v7 = vadd.f32 1.0, %v1617_v29  ;;  %v1786_v21 = vpop.permute.xlu0 %1785 }
 0x6b5   :  { %v1567_v27 = vsub.f32 1.0, %v1551_v18  ;;  %2125 = vmatpush3.msra.mxu0 %v1668_v10  ;;  %v1633_v49 = vmul.f32 0.5, %v3225_v31  ;;  %vm1583_vm1 = vcmp.ge.f32.partialorder %v3226_v20, 0.0  ;;  %v1632_v19 = vmul.f32 0.5, %v3227_v26 }
 0x6b6   :  { %v1616_v58 = vsel %vm1584_vm14, %v1568_v36, %v1600_v51  ;;  %2126 = vmatprep.subr.mxu0 %v1667_v25  ;;  %v1666_v30 = vmul.f32 %v1650_v55, %v1634_v42  ;;  %v1631_v17 = vmul.f32 0.5, %v3228_v24 }
 0x6b7   :  { %v1648_v35 = vadd.f32 1.0, %v1616_v58  ;;  %v1599_v39 = vsub.f32 0.0, %v1567_v27  ;;  %2127 = vmatpush3.msra.mxu0 %v1667_v25  ;;  %v1665_v46 = vmul.f32 %v1649_v7, %v1633_v49 }
 0x6b8   :  { %2128 = vmatprep.subr.mxu0 %v1666_v30 }
 0x6b9   :  { %v1615_v34 = vsel %vm1583_vm1, %v1567_v27, %v1599_v39  ;;  %2129 = vmatpush3.msra.mxu0 %v1666_v30  ;;  %v1664_v57 = vmul.f32 %v1648_v35, %v1632_v19 }
 0x6ba   :  { %v1647_v3 = vadd.f32 1.0, %v1615_v34  ;;  %2130 = vmatprep.subr.mxu0 %v1665_v46 }
 0x6bb   :  { %2131 = vmatpush3.msra.mxu0 %v1665_v46 }
 0x6bc   :  { %2132 = vmatprep.subr.mxu0 %v1664_v57  ;;  %v1663_v4 = vmul.f32 %v1647_v3, %v1631_v17 }
 0x6bd   :  { %2133 = vmatpush3.msra.mxu0 %v1664_v57 }
 0x6be   :  { %2134 = vmatprep.subr.mxu0 %v1663_v4 }
 0x6bf   :  { %2135 = vmatpush3.msra.mxu0 %v1663_v4 }
 0x6c0   :  { %2137 = vmatmul.mubr.f32.vlgmr.msra.gmra.mxu0 %v1680_v38 }
 0x6c1   :  { %2139 = vmatprep.mubr.f32.mxu0 %v1681_v45 }
 0x6c4   :  { %2140 = vmatmul.mubr.f32.gmra.mxu0 %v1682_v41 }
 0x780   :  { %v2138_v63 = vpop.f32.mrf.mxu0 }
 0x781   :  { %v1769_v13 = vadd.f32 %v2138_v63, %v3229_v47 }
 0x782   :  { %v1749_v16 = vpop.f32.mrf.mxu0 }
 0x783   :  { %v1789_v9 = vadd.f32 %v1778_v6, %v1769_v13  ;;  %v1768_v2 = vadd.f32 %v1749_v16, %v3230_v56 }
 0x784   :  { %v2141_v44 = vpop.f32.mrf.mxu0 }
 0x785   :  { %1793 = vst [vmem:[%s3167_s8 + $0x8] sm:$0xff] %v1789_v9  ;;  %v1788_v61 = vadd.f32 %v1774_v5, %v1768_v2  ;;  %v1771_v8 = vadd.f32 %v2141_v44, %v3231_v48 }
 0x786   :  { %v1759_v37 = vpop.f32.mrf.mxu0 }
 0x787   :  { %1792 = vst [vmem:[%s3167_s8] sm:$0xff] %v1788_v61  ;;  %v1791_v62 = vadd.f32 %v1786_v21, %v1771_v8  ;;  %v1770_v0 = vadd.f32 %v1759_v37, %v3232_v11 }
 0x789   :  { %1795 = vst [vmem:[%s3167_s8 + $0x18] sm:$0xff] %v1791_v62  ;;  %v1790_v22 = vadd.f32 %v1782_v59, %v1770_v0 }
 0x78b   :  { %1794 = vst [vmem:[%s3167_s8 + $0x10] sm:$0xff] %v1790_v22 }

</bundles_post_ra>
